<compile_context>
chip_gen: v7x
topology: tpu7x:2x2x1
jax: 0.10.0
libtpu: 0.0.40
codegen_flags: <defaults>
</compile_context>

<pallas_src>
import functools

import jax
import jax.numpy as jnp
from jax.experimental import pallas as pl
from jax.experimental.pallas import tpu as pltpu

EPS = 1e-5     # PyTorch BatchNorm2d default eps
LANES = 128


def _round_up(x, m):
    return (x + m - 1) // m * m


def _vmem_limits():
    """Generation-aware scoped-VMEM limit and tile-sizing budget."""
    phys = 64 * 1024 * 1024            # conservative default (v7x per-TC VMEM)
    try:
        phys = int(pltpu.get_tpu_info().vmem_capacity_bytes)
    except Exception:
        pass
    limit = max(int(phys * 0.70), 32 * 1024 * 1024)    # handed to the compiler
    budget = max(int(phys * 0.35), 16 * 1024 * 1024)   # target working set
    return limit, budget


VMEM_LIMIT_BYTES, VMEM_TILE_BUDGET = _vmem_limits()


def _choose_tile_rows(m, streamed_bytes_per_row, resident_bytes=0, max_rows=2048):
    """Rows per grid step for row-streamed passes.  Accounts for the x2
    double-buffering of streamed blocks plus resident (weight) bytes, keeps at
    least 2 grid steps, and prefers an exact divisor of m (no padding copy)."""
    avail = max(VMEM_TILE_BUDGET - resident_bytes, 256 * 1024)
    t = avail // max(2 * streamed_bytes_per_row, 1)
    t = int(max(8, min(max_rows, t)))
    if m >= 16:
        t = min(t, max(8, (m // 2) // 8 * 8))
    t = max(8, (t // 8) * 8)
    best = 0
    d = 8
    while d <= min(t, m):
        if m % d == 0:
            best = d
        d += 8
    return best if best else t


# ----------------------------------------------------------------------------
# Pallas kernels.
# ----------------------------------------------------------------------------
def _tap_conv_kernel(*refs, kh, kw, wo, c_out, pad, h_valid, w_valid,
                     apply_act, with_aux):
    """One output row (all Wo columns) of a stride-1 conv:
      - kh halo'd row slabs of the spatially padded source are read per step,
      - optional fused per-channel affine + ReLU on the source (BN of the
        previous conv), with masking of the zero-padded border,
      - kh*kw tap matmuls accumulated in fp32 (MXU),
      - bf16 output row + packed fp32 (sum, sum-of-squares) per channel
        accumulated across the (arbitrary) H grid axis,
      - optional auxiliary 1x1 GEMM (fused downsample) with its own stats."""
    idx = 0
    taps = refs[idx:idx + kh]
    idx += kh
    w_ref = refs[idx]
    idx += 1
    if apply_act:
        asc_ref, ash_ref = refs[idx], refs[idx + 1]
        idx += 2
    if with_aux:
        aux_ref, auxw_ref = refs[idx], refs[idx + 1]
        idx += 2
    y_ref, stats_ref = refs[idx], refs[idx + 1]
    idx += 2
    if with_aux:
        yd_ref, dstats_ref = refs[idx], refs[idx + 1]
        idx += 2

    h_out = pl.program_id(1)
    coutp = w_ref.shape[-1]
    acc = jnp.zeros((wo, coutp), jnp.float32)

    if apply_act:
        sc = asc_ref[...].astype(jnp.float32)           # (1, Cs)
        sh = ash_ref[...].astype(jnp.float32)
        wp = taps[0].shape[-2]
        col = jax.lax.broadcasted_iota(jnp.int32, (wp, 1), 0)
        col_ok = jnp.logical_and(col >= pad, col < pad + w_valid)

    for i in range(kh):
        slab = taps[i][...]                             # (Wp, Cs) bf16
        if apply_act:
            row_ok = jnp.logical_and(h_out + i >= pad, h_out + i < pad + h_valid)
            a = jnp.maximum(slab.astype(jnp.float32) * sc + sh, 0.0)
            a = jnp.where(jnp.logical_and(row_ok, col_ok), a, 0.0)
            a = a.astype(jnp.bfloat16)
        else:
            a = slab
        for j in range(kw):
            acc = acc + jnp.dot(a[j:j + wo, :], w_ref[i * kw + j],
                                preferred_element_type=jnp.float32)

    yv = acc[:, :c_out]                                 # fp32, true channels
    y_ref[...] = yv.astype(y_ref.dtype)                 # bf16 store
    contrib = jnp.concatenate(
        [jnp.sum(yv, axis=0, keepdims=True),
         jnp.sum(yv * yv, axis=0, keepdims=True)], axis=0)

    @pl.when(h_out == 0)
    def _():
        stats_ref[...] = jnp.zeros_like(stats_ref)
    stats_ref[...] += contrib

    if with_aux:
        accd = jnp.dot(aux_ref[...], auxw_ref[...],
                       preferred_element_type=jnp.float32)
        ydv = accd[:, :c_out]
        yd_ref[...] = ydv.astype(yd_ref.dtype)
        dcontrib = jnp.concatenate(
            [jnp.sum(ydv, axis=0, keepdims=True),
             jnp.sum(ydv * ydv, axis=0, keepdims=True)], axis=0)

        @pl.when(h_out == 0)
        def _():
            dstats_ref[...] = jnp.zeros_like(dstats_ref)
        dstats_ref[...] += dcontrib


def _gemm_stats_kernel(x_ref, w_ref, y_ref, stats_ref, *, c_out):
    """Fallback (stride > 1 conv1): bf16 im2col GEMM with fp32 accumulation,
    bf16 output tile + packed per-tile (sum, sum-of-squares)."""
    acc = jnp.dot(x_ref[...], w_ref[...], preferred_element_type=jnp.float32)
    yv = acc[:, :c_out]
    y_ref[...] = yv.astype(y_ref.dtype)
    stats_ref[...] = jnp.concatenate(
        [jnp.sum(yv, axis=0, keepdims=True),
         jnp.sum(yv * yv, axis=0, keepdims=True)], axis=0)


def _bn_relu_kernel(*refs, mode):
    """Final pass: bn2 affine + residual + ReLU.  mode: "raw" | "affine"."""
    if mode == "raw":
        y_ref, sc_ref, sh_ref, r_ref, o_ref = refs
    else:  # "affine": downsample conv output + its BN affine
        y_ref, sc_ref, sh_ref, yd_ref, dsc_ref, dsh_ref, o_ref = refs
    out = y_ref[...].astype(jnp.float32) * sc_ref[...] + sh_ref[...]
    if mode == "raw":
        out = out + r_ref[...].astype(jnp.float32)
    else:
        out = out + yd_ref[...].astype(jnp.float32) * dsc_ref[...] + dsh_ref[...]
    o_ref[...] = jnp.maximum(out, 0.0).astype(o_ref.dtype)


# ----------------------------------------------------------------------------
# pallas_call wrappers.
# ----------------------------------------------------------------------------
def _tap_conv(src, w_taps, c_out, *, kh, kw, ho, wo, pad=0, h_valid=0,
              w_valid=0, act=None, aux=None):
    """src: spatially padded NHWC bf16 (N, Hp, Wp, Cs).  w_taps: (kh*kw, Cs,
    Coutp) bf16.  Returns (y bf16 (N,ho,wo,c_out), stats f32 (N,2,c_out))
    plus (yd, dstats) when aux=(xd, wd) is given."""
    n = src.shape[0]
    wp = src.shape[2]
    cs = src.shape[3]
    coutp = w_taps.shape[-1]

    args, in_specs = [], []
    for i in range(kh):
        args.append(src)
        in_specs.append(pl.BlockSpec((None, None, wp, cs),
                                     lambda nn, hh, i=i: (nn, hh + i, 0, 0)))
    args.append(w_taps)
    in_specs.append(pl.BlockSpec((kh * kw, cs, coutp), lambda nn, hh: (0, 0, 0)))

    apply_act = act is not None
    if apply_act:
        sc, sh = act
        args += [sc, sh]
        in_specs += [pl.BlockSpec((1, cs), lambda nn, hh: (0, 0)),
                     pl.BlockSpec((1, cs), lambda nn, hh: (0, 0))]

    with_aux = aux is not None
    if with_aux:
        xd, wd = aux
        caux = xd.shape[-1]
        args += [xd, wd]
        in_specs += [pl.BlockSpec((None, None, wo, caux),
                                  lambda nn, hh: (nn, hh, 0, 0)),
                     pl.BlockSpec((caux, coutp), lambda nn, hh: (0, 0))]

    out_shapes = [jax.ShapeDtypeStruct((n, ho, wo, c_out), jnp.bfloat16),
                  jax.ShapeDtypeStruct((n, 2, c_out), jnp.float32)]
    out_specs = [pl.BlockSpec((None, None, wo, c_out),
                              lambda nn, hh: (nn, hh, 0, 0)),
                 pl.BlockSpec((None, 2, c_out), lambda nn, hh: (nn, 0, 0))]
    if with_aux:
        out_shapes += [jax.ShapeDtypeStruct((n, ho, wo, c_out), jnp.bfloat16),
                       jax.ShapeDtypeStruct((n, 2, c_out), jnp.float32)]
        out_specs += [pl.BlockSpec((None, None, wo, c_out),
                                   lambda nn, hh: (nn, hh, 0, 0)),
                      pl.BlockSpec((None, 2, c_out), lambda nn, hh: (nn, 0, 0))]

    kernel = functools.partial(
        _tap_conv_kernel, kh=kh, kw=kw, wo=wo, c_out=c_out, pad=pad,
        h_valid=h_valid, w_valid=w_valid, apply_act=apply_act,
        with_aux=with_aux)

    return pl.pallas_call(
        kernel,
        grid=(n, ho),
        in_specs=in_specs,
        out_specs=tuple(out_specs),
        out_shape=tuple(out_shapes),
        compiler_params=pltpu.CompilerParams(
            dimension_semantics=("parallel", "arbitrary"),
            vmem_limit_bytes=VMEM_LIMIT_BYTES),
    )(*args)


def _conv_gemm_stats(patches, w_gemm, c_out):
    """Fallback GEMM path.  patches: (M, K) bf16; w_gemm: (K, Coutp) bf16."""
    m, k = patches.shape
    coutp = w_gemm.shape[1]
    streamed = k * 2 + c_out * 2                 # patch tile in + y tile out
    resident = k * coutp * 2
    tile = _choose_tile_rows(m, streamed, resident)
    m_pad = _round_up(m, tile)
    if m_pad != m:
        patches = jnp.pad(patches, ((0, m_pad - m), (0, 0)))
    nt = m_pad // tile

    y, stats = pl.pallas_call(
        functools.partial(_gemm_stats_kernel, c_out=c_out),
        grid=(nt,),
        in_specs=[pl.BlockSpec((tile, k), lambda i: (i, 0)),
                  pl.BlockSpec((k, coutp), lambda i: (0, 0))],
        out_specs=(pl.BlockSpec((tile, c_out), lambda i: (i, 0)),
                   pl.BlockSpec((None, 2, c_out), lambda i: (i, 0, 0))),
        out_shape=(jax.ShapeDtypeStruct((m_pad, c_out), jnp.bfloat16),
                   jax.ShapeDtypeStruct((nt, 2, c_out), jnp.float32)),
        compiler_params=pltpu.CompilerParams(
            dimension_semantics=("parallel",),
            vmem_limit_bytes=VMEM_LIMIT_BYTES),
    )(patches, w_gemm)
    return y[:m], stats


def _bn_relu(y, scale, shift, raw_residual=None, affine_residual=None):
    assert (raw_residual is None) != (affine_residual is None)
    m, c = y.shape
    mode = "raw" if raw_residual is not None else "affine"
    streamed = c * 2 + c * 4 + c * 2            # y bf16 + out f32 + residual bf16
    tile = _choose_tile_rows(m, streamed)
    m_pad = _round_up(m, tile)

    def padded(a):
        return a if a.shape[0] == m_pad else jnp.pad(a, ((0, m_pad - a.shape[0]), (0, 0)))

    args = [padded(y), scale, shift]
    in_specs = [pl.BlockSpec((tile, c), lambda i: (i, 0)),
                pl.BlockSpec((1, c), lambda i: (0, 0)),
                pl.BlockSpec((1, c), lambda i: (0, 0))]
    if mode == "raw":
        args.append(padded(raw_residual))
        in_specs.append(pl.BlockSpec((tile, c), lambda i: (i, 0)))
    else:
        yd, dsc, dsh = affine_residual
        args += [padded(yd), dsc, dsh]
        in_specs += [pl.BlockSpec((tile, c), lambda i: (i, 0)),
                     pl.BlockSpec((1, c), lambda i: (0, 0)),
                     pl.BlockSpec((1, c), lambda i: (0, 0))]

    out = pl.pallas_call(
        functools.partial(_bn_relu_kernel, mode=mode),
        grid=(m_pad // tile,),
        in_specs=in_specs,
        out_specs=pl.BlockSpec((tile, c), lambda i: (i, 0)),
        out_shape=jax.ShapeDtypeStruct((m_pad, c), jnp.float32),
        compiler_params=pltpu.CompilerParams(
            dimension_semantics=("parallel",),
            vmem_limit_bytes=VMEM_LIMIT_BYTES),
    )(*args)
    return out[:m]


# ----------------------------------------------------------------------------
# Plain-JAX glue: weight prep, BN fold, im2col fallback.
# ----------------------------------------------------------------------------
def _prep_tap_weight(w, coutp):
    # PyTorch (Cout, Cs, kh, kw) -> (kh*kw, Cs, Coutp), bf16, lane-padded Cout.
    cout, cs, kh, kw = w.shape
    wt = jnp.transpose(w, (2, 3, 1, 0)).reshape(kh * kw, cs, cout)
    wt = jnp.pad(wt, ((0, 0), (0, 0), (0, coutp - cout)))
    return wt.astype(jnp.bfloat16)


def _prep_gemm_weight(w, coutp):
    # (Cout, Cin, kh, kw) -> (kh*kw*Cin, Coutp), matching im2col order.
    cout, cin, kh, kw = w.shape
    wg = jnp.transpose(w, (2, 3, 1, 0)).reshape(kh * kw * cin, cout)
    wg = jnp.pad(wg, ((0, 0), (0, coutp - cout)))
    return wg.astype(jnp.bfloat16)


def _im2col(x, kh, kw, stride, padding):
    n, h, w, c = x.shape
    xp = jnp.pad(x, ((0, 0), (padding, padding), (padding, padding), (0, 0)))
    ho = (h + 2 * padding - kh) // stride + 1
    wo = (w + 2 * padding - kw) // stride + 1
    cols = []
    for i in range(kh):
        for j in range(kw):
            cols.append(xp[:, i:i + stride * (ho - 1) + 1:stride,
                            j:j + stride * (wo - 1) + 1:stride, :])
    patches = jnp.stack(cols, axis=3)           # (N, Ho, Wo, kh*kw, C)
    return patches.reshape(n * ho * wo, kh * kw * c), ho, wo


def _bn_coeffs(stats, gamma, beta, m_true):
    """stats: (..., 2, C) partial (sum, sum-of-squares); fold BN into
    (scale, shift).  Zero-padded GEMM rows contribute 0, so dividing by the
    true element count gives exact batch statistics (biased var, PyTorch)."""
    total = jnp.sum(stats.astype(jnp.float32), axis=0)   # (2, C)
    mean = total[0] / m_true
    # TODO(synk): E[y^2]-E[y]^2 can cancel for large-mean activations; a
    # shifted / Welford formulation would be safer for production networks.
    var = jnp.maximum(total[1] / m_true - mean * mean, 0.0)
    inv = jax.lax.rsqrt(var + EPS)
    scale = gamma.astype(jnp.float32) * inv
    shift = beta.astype(jnp.float32) - mean * scale
    return scale.reshape(1, -1), shift.reshape(1, -1)


# ----------------------------------------------------------------------------
# BasicBlock forward (training-mode BatchNorm, matching the PyTorch module).
# ----------------------------------------------------------------------------
@functools.partial(jax.jit, static_argnums=(2, 3, 4))
def basic_block_forward(x_nchw, params, kernel_size, stride, padding):
    x = jnp.transpose(x_nchw, (0, 2, 3, 1)).astype(jnp.float32)   # NHWC
    n, h, w, cin = x.shape
    kh = kw = kernel_size
    p = padding
    cout = params["conv1_w"].shape[0]
    coutp = _round_up(cout, LANES)

    # ---------------- conv1 (+ batch statistics) ----------------
    if stride == 1:
        xp = jnp.pad(x.astype(jnp.bfloat16), ((0, 0), (p, p), (p, p), (0, 0)))
        ho1 = h + 2 * p - kh + 1
        wo1 = w + 2 * p - kw + 1
        w1 = _prep_tap_weight(params["conv1_w"], coutp)
        y1, st1 = _tap_conv(xp, w1, cout, kh=kh, kw=kw, ho=ho1, wo=wo1)
    else:
        patches, ho1, wo1 = _im2col(x.astype(jnp.bfloat16), kh, kw, stride, p)
        w1 = _prep_gemm_weight(params["conv1_w"], coutp)
        y1_flat, st1 = _conv_gemm_stats(patches, w1, cout)
        y1 = y1_flat.reshape(n, ho1, wo1, cout)
    sc1, sh1 = _bn_coeffs(st1, params["bn1_gamma"], params["bn1_beta"],
                          n * ho1 * wo1)

    # ----- conv2, with bn1+relu fused on its input (+ fused downsample) -----
    y1p = jnp.pad(y1, ((0, 0), (p, p), (p, p), (0, 0)))   # bf16 spatial halo
    ho2 = ho1 + 2 * p - kh + 1
    wo2 = wo1 + 2 * p - kw + 1
    w2 = _prep_tap_weight(params["conv2_w"], coutp)

    if stride > 1:
        xd = x[:, ::stride, ::stride, :].astype(jnp.bfloat16)
        wd = _prep_tap_weight(params["ds_w"], coutp)[0]     # (Cin, Coutp)
        y2, st2, yd, std = _tap_conv(
            y1p, w2, cout, kh=kh, kw=kw, ho=ho2, wo=wo2,
            pad=p, h_valid=ho1, w_valid=wo1, act=(sc1, sh1), aux=(xd, wd))
        scd, shd = _bn_coeffs(std, params["ds_gamma"], params["ds_beta"],
                              n * ho2 * wo2)
    else:
        y2, st2 = _tap_conv(
            y1p, w2, cout, kh=kh, kw=kw, ho=ho2, wo=wo2,
            pad=p, h_valid=ho1, w_valid=wo1, act=(sc1, sh1))
    sc2, sh2 = _bn_coeffs(st2, params["bn2_gamma"], params["bn2_beta"],
                          n * ho2 * wo2)

    # ---------------- bn2 affine + residual + relu ----------------
    m2 = n * ho2 * wo2
    y2f = y2.reshape(m2, cout)
    if stride > 1:
        out = _bn_relu(y2f, sc2, sh2,
                       affine_residual=(yd.reshape(m2, cout), scd, shd))
    else:
        # identity residual (valid when Cin == Cout, standard BasicBlock).
        # TODO(synk): Cin != Cout with stride == 1 has no defined residual.
        res = x.astype(jnp.bfloat16).reshape(m2, cin)
        out = _bn_relu(y2f, sc2, sh2, raw_residual=res)

    out_nhwc = out.reshape(n, ho2, wo2, cout)
    return jnp.transpose(out_nhwc, (0, 3, 1, 2))            # back to NCHW


# ----------------------------------------------------------------------------
# Pure-JAX fp32 reference (lax conv) for correctness checking.
# ----------------------------------------------------------------------------
def _conv_ref(x, w, stride, padding):
    return jax.lax.conv_general_dilated(
        x, w, (stride, stride),
        [(padding, padding), (padding, padding)],
        dimension_numbers=("NCHW", "OIHW", "NCHW"))


def _bn_train_ref(y, gamma, beta):
    mean = jnp.mean(y, axis=(0, 2, 3), keepdims=True)
    var = jnp.mean((y - mean) ** 2, axis=(0, 2, 3), keepdims=True)
    yn = (y - mean) * jax.lax.rsqrt(var + EPS)
    return yn * gamma.reshape(1, -1, 1, 1) + beta.reshape(1, -1, 1, 1)


def basic_block_reference(x, params, kernel_size, stride, padding):
    out = _conv_ref(x, params["conv1_w"], stride, padding)
    out = _bn_train_ref(out, params["bn1_gamma"], params["bn1_beta"])
    out = jnp.maximum(out, 0.0)
    out = _conv_ref(out, params["conv2_w"], 1, padding)
    out = _bn_train_ref(out, params["bn2_gamma"], params["bn2_beta"])
    if stride > 1:
        residual = _conv_ref(x, params["ds_w"], stride, 0)
        residual = _bn_train_ref(residual, params["ds_gamma"], params["ds_beta"])
    else:
        residual = x
    return jnp.maximum(out + residual, 0.0)


# ----------------------------------------------------------------------------
def _make_params(key, in_planes, out_planes, kernel_size, with_ds):
    k_w1, k_w2, k_wd = jax.random.split(key, 3)
    params = {
        "conv1_w": 0.1 * jax.random.normal(
            k_w1, (out_planes, in_planes, kernel_size, kernel_size), jnp.float32),
        "bn1_gamma": jnp.ones((out_planes,), jnp.float32),
        "bn1_beta": jnp.zeros((out_planes,), jnp.float32),
        "conv2_w": 0.1 * jax.random.normal(
            k_w2, (out_planes, out_planes, kernel_size, kernel_size), jnp.float32),
        "bn2_gamma": jnp.ones((out_planes,), jnp.float32),
        "bn2_beta": jnp.zeros((out_planes,), jnp.float32),
    }
    if with_ds:
        params.update({
            "ds_w": 0.1 * jax.random.normal(
                k_wd, (out_planes, in_planes, 1, 1), jnp.float32),
            "ds_gamma": jnp.ones((out_planes,), jnp.float32),
            "ds_beta": jnp.zeros((out_planes,), jnp.float32),
        })
    return params


if __name__ == "__main__":
    key = jax.random.PRNGKey(0)
    k1, k2, kx1, kx2 = jax.random.split(key, 4)

    # Case 1: BasicBlock(4, 8, kernel_size=3, stride=2, padding=1)
    # -> exercises the im2col fallback for conv1 and the fused downsample.
    in_p, out_p, ks, stride, pad = 4, 8, 3, 2, 1
    N, H, W = 2, 16, 16
    params = _make_params(k1, in_p, out_p, ks, with_ds=True)
    x = jax.random.normal(kx1, (N, in_p, H, W), jnp.float32)

    out = jax.block_until_ready(basic_block_forward(x, params, ks, stride, pad))
    ref = basic_block_reference(x, params, ks, stride, pad)
    assert out.shape == ref.shape, (out.shape, ref.shape)
    # bf16 MXU operands with fp32 accumulation vs. an all-fp32 reference.
    err = float(jnp.max(jnp.abs(out - ref)))
    assert jnp.allclose(out, ref, atol=5e-2, rtol=5e-2), err

    # Case 2: BasicBlock(8, 8, kernel_size=3, stride=1, padding=1)
    # -> exercises the in-kernel tap path for both convs + identity residual.
    in_p2 = out_p2 = 8
    params2 = _make_params(k2, in_p2, out_p2, ks, with_ds=False)
    x2 = jax.random.normal(kx2, (N, in_p2, H, W), jnp.float32)

    out2 = jax.block_until_ready(basic_block_forward(x2, params2, ks, 1, pad))
    ref2 = basic_block_reference(x2, params2, ks, 1, pad)
    assert out2.shape == ref2.shape, (out2.shape, ref2.shape)
    err2 = float(jnp.max(jnp.abs(out2 - ref2)))
    assert jnp.allclose(out2, ref2, atol=5e-2, rtol=5e-2), err2

    print("KERNEL_OK")
</pallas_src>

<mosaic_0001>
module attributes {stable_mosaic.version = 11 : i64} {
  func.func @_gemm_stats_kernel(%arg0: i32, %arg1: memref<64x36xbf16, #tpu.memory_space<vmem>>, %arg2: memref<36x128xbf16, #tpu.memory_space<vmem>>, %arg3: memref<64x8xbf16, #tpu.memory_space<vmem>>, %arg4: memref<1x2x8xf32, #tpu.memory_space<vmem>>) attributes {dimension_semantics = [#tpu.dimension_semantics<parallel>], iteration_bounds = array<i64: 2>, scalar_prefetch = 0 : i64, scratch_operands = 0 : i64, tpu.core_type = #tpu.core_type<tc>, window_params = [{transform_indices = @transform_0, window_bounds = array<i64: 64, 36>}, {pipeline_mode = #tpu.pipeline_mode<synchronous>, transform_indices = @transform_1, window_bounds = array<i64: 36, 128>}, {transform_indices = @transform_2, window_bounds = array<i64: 64, 8>}, {transform_indices = @transform_3, window_bounds = array<i64: 1, 2, 8>}]} {
    %c0 = arith.constant 0 : index
    %c0_0 = arith.constant 0 : index
    %0 = vector.load %arg1[%c0, %c0_0] : memref<64x36xbf16, #tpu.memory_space<vmem>>, vector<64x36xbf16>
    %c0_1 = arith.constant 0 : index
    %c0_2 = arith.constant 0 : index
    %1 = vector.load %arg2[%c0_1, %c0_2] : memref<36x128xbf16, #tpu.memory_space<vmem>>, vector<36x128xbf16>
    %cst = arith.constant dense<0.000000e+00> : vector<64x128xf32>
    %2 = tpu.matmul %0, %1, %cst {dimension_numbers = #tpu.dot_dimension_numbers<[1], [0], [0], [1], [0, 0, 1, 1], [], []>} : vector<64x36xbf16>, vector<36x128xbf16>, vector<64x128xf32> -> vector<64x128xf32>
    %3 = vector.extract_strided_slice %2 {offsets = [0, 0], sizes = [64, 8], strides = [1, 1]} : vector<64x128xf32> to vector<64x8xf32>
    %4 = arith.truncf %3 : vector<64x8xf32> to vector<64x8xbf16>
    %c0_3 = arith.constant 0 : index
    %c0_4 = arith.constant 0 : index
    %5 = vector.load %arg3[%c0_3, %c0_4] : memref<64x8xbf16, #tpu.memory_space<vmem>>, vector<64x8xbf16>
    tpu.vector_store %arg3[%c0_3, %c0_4], %4 {strides = array<i32>} : memref<64x8xbf16, #tpu.memory_space<vmem>>, vector<64x8xbf16>,
    %cst_5 = arith.constant dense<0.000000e+00> : vector<8xf32>
    %6 = vector.multi_reduction <add>, %3, %cst_5 [0] : vector<64x8xf32> to vector<8xf32>
    %7 = vector.shape_cast %6 : vector<8xf32> to vector<1x8xf32>
    %8 = arith.mulf %3, %3 : vector<64x8xf32>
    %cst_6 = arith.constant dense<0.000000e+00> : vector<8xf32>
    %9 = vector.multi_reduction <add>, %8, %cst_6 [0] : vector<64x8xf32> to vector<8xf32>
    %10 = vector.shape_cast %9 : vector<8xf32> to vector<1x8xf32>
    %11 = tpu.concatenate %7, %10 in 0 : vector<1x8xf32>, vector<1x8xf32> -> vector<2x8xf32>
    %c0_7 = arith.constant 0 : index
    %c0_8 = arith.constant 0 : index
    %c0_9 = arith.constant 0 : index
    %12 = vector.load %arg4[%c0_7, %c0_8, %c0_9] : memref<1x2x8xf32, #tpu.memory_space<vmem>>, vector<1x2x8xf32>
    %13 = vector.shape_cast %12 : vector<1x2x8xf32> to vector<2x8xf32>
    %14 = vector.shape_cast %11 : vector<2x8xf32> to vector<1x2x8xf32>
    tpu.vector_store %arg4[%c0_7, %c0_8, %c0_9], %14 {strides = array<i32>} : memref<1x2x8xf32, #tpu.memory_space<vmem>>, vector<1x2x8xf32>,
    return
  }
  func.func @transform_0(%arg0: i32) -> (i32, i32) {
    %c0_i32 = arith.constant 0 : i32
    %c0_i32_0 = arith.constant 0 : i32
    return %arg0, %c0_i32 : i32, i32
  }
  func.func @transform_1(%arg0: i32) -> (i32, i32) {
    %c0_i32 = arith.constant 0 : i32
    %c0_i32_0 = arith.constant 0 : i32
    %c0_i32_1 = arith.constant 0 : i32
    return %c0_i32, %c0_i32_0 : i32, i32
  }
  func.func @transform_2(%arg0: i32) -> (i32, i32) {
    %c0_i32 = arith.constant 0 : i32
    %c0_i32_0 = arith.constant 0 : i32
    return %arg0, %c0_i32 : i32, i32
  }
  func.func @transform_3(%arg0: i32) -> (i32, i32, i32) {
    %c0_i32 = arith.constant 0 : i32
    %c0_i32_0 = arith.constant 0 : i32
    %c0_i32_1 = arith.constant 0 : i32
    return %arg0, %c0_i32, %c0_i32_0 : i32, i32, i32
  }
}

module attributes {stable_mosaic.version = 11 : i64} {
  func.func @_tap_conv_kernel(%arg0: i32, %arg1: i32, %arg2: memref<1x1x10x8xbf16, #tpu.memory_space<vmem>>, %arg3: memref<1x1x10x8xbf16, #tpu.memory_space<vmem>>, %arg4: memref<1x1x10x8xbf16, #tpu.memory_space<vmem>>, %arg5: memref<9x8x128xbf16, #tpu.memory_space<vmem>>, %arg6: memref<1x8xf32, #tpu.memory_space<vmem>>, %arg7: memref<1x8xf32, #tpu.memory_space<vmem>>, %arg8: memref<1x1x8x4xbf16, #tpu.memory_space<vmem>>, %arg9: memref<4x128xbf16, #tpu.memory_space<vmem>>, %arg10: memref<1x1x8x8xbf16, #tpu.memory_space<vmem>>, %arg11: memref<1x2x8xf32, #tpu.memory_space<vmem>>, %arg12: memref<1x1x8x8xbf16, #tpu.memory_space<vmem>>, %arg13: memref<1x2x8xf32, #tpu.memory_space<vmem>>) attributes {dimension_semantics = [#tpu.dimension_semantics<parallel>, #tpu.dimension_semantics<arbitrary>], iteration_bounds = array<i64: 2, 8>, scalar_prefetch = 0 : i64, scratch_operands = 0 : i64, tpu.core_type = #tpu.core_type<tc>, window_params = [{transform_indices = @transform_0, window_bounds = array<i64: 1, 1, 10, 8>}, {transform_indices = @transform_1, window_bounds = array<i64: 1, 1, 10, 8>}, {transform_indices = @transform_2, window_bounds = array<i64: 1, 1, 10, 8>}, {pipeline_mode = #tpu.pipeline_mode<synchronous>, transform_indices = @transform_3, window_bounds = array<i64: 9, 8, 128>}, {pipeline_mode = #tpu.pipeline_mode<synchronous>, transform_indices = @transform_4, window_bounds = array<i64: 1, 8>}, {pipeline_mode = #tpu.pipeline_mode<synchronous>, transform_indices = @transform_5, window_bounds = array<i64: 1, 8>}, {transform_indices = @transform_6, window_bounds = array<i64: 1, 1, 8, 4>}, {pipeline_mode = #tpu.pipeline_mode<synchronous>, transform_indices = @transform_7, window_bounds = array<i64: 4, 128>}, {transform_indices = @transform_8, window_bounds = array<i64: 1, 1, 8, 8>}, {transform_indices = @transform_9, window_bounds = array<i64: 1, 2, 8>}, {transform_indices = @transform_10, window_bounds = array<i64: 1, 1, 8, 8>}, {transform_indices = @transform_11, window_bounds = array<i64: 1, 2, 8>}]} {
    %cst = arith.constant 0.000000e+00 : f32
    %0 = vector.broadcast %cst : f32 to vector<8x128xf32>
    %c0 = arith.constant 0 : index
    %c0_0 = arith.constant 0 : index
    %1 = vector.load %arg6[%c0, %c0_0] : memref<1x8xf32, #tpu.memory_space<vmem>>, vector<1x8xf32>
    %c0_1 = arith.constant 0 : index
    %c0_2 = arith.constant 0 : index
    %2 = vector.load %arg7[%c0_1, %c0_2] : memref<1x8xf32, #tpu.memory_space<vmem>>, vector<1x8xf32>
    %3 = tpu.iota {dimensions = array<i32: 0>} : vector<10x1xi32>
    %c1_i32 = arith.constant 1 : i32
    %4 = vector.broadcast %c1_i32 : i32 to vector<10x1xi32>
    %5 = arith.cmpi sge, %3, %4 : vector<10x1xi32>
    %c9_i32 = arith.constant 9 : i32
    %6 = vector.broadcast %c9_i32 : i32 to vector<10x1xi32>
    %7 = arith.cmpi slt, %3, %6 : vector<10x1xi32>
    %8 = arith.andi %5, %7 : vector<10x1xi1>
    %c0_3 = arith.constant 0 : index
    %c0_4 = arith.constant 0 : index
    %c0_5 = arith.constant 0 : index
    %c0_6 = arith.constant 0 : index
    %9 = vector.load %arg2[%c0_3, %c0_4, %c0_5, %c0_6] : memref<1x1x10x8xbf16, #tpu.memory_space<vmem>>, vector<1x1x10x8xbf16>
    %10 = vector.shape_cast %9 : vector<1x1x10x8xbf16> to vector<10x8xbf16>
    %c0_i32 = arith.constant 0 : i32
    %11 = arith.addi %arg1, %c0_i32 : i32
    %c1_i32_7 = arith.constant 1 : i32
    %12 = arith.cmpi sge, %11, %c1_i32_7 : i32
    %c0_i32_8 = arith.constant 0 : i32
    %13 = arith.addi %arg1, %c0_i32_8 : i32
    %c9_i32_9 = arith.constant 9 : i32
    %14 = arith.cmpi slt, %13, %c9_i32_9 : i32
    %15 = arith.andi %12, %14 : i1
    %16 = arith.extf %10 : vector<10x8xbf16> to vector<10x8xf32>
    %17 = vector.broadcast %1 : vector<1x8xf32> to vector<10x8xf32>
    %18 = arith.mulf %16, %17 : vector<10x8xf32>
    %19 = vector.broadcast %2 : vector<1x8xf32> to vector<10x8xf32>
    %20 = arith.addf %18, %19 : vector<10x8xf32>
    %cst_10 = arith.constant 0.000000e+00 : f32
    %21 = vector.broadcast %cst_10 : f32 to vector<10x8xf32>
    %22 = arith.maximumf %20, %21 : vector<10x8xf32>
    %23 = vector.broadcast %15 : i1 to vector<10x1xi1>
    %24 = arith.andi %23, %8 : vector<10x1xi1>
    %cst_11 = arith.constant 0.000000e+00 : f32
    %25 = vector.shape_cast %24 : vector<10x1xi1> to vector<10x1xi1>
    %26 = vector.broadcast %25 : vector<10x1xi1> to vector<10x8xi1>
    %27 = vector.broadcast %cst_11 : f32 to vector<10x8xf32>
    %28 = arith.select %26, %22, %27 : vector<10x8xi1>, vector<10x8xf32>
    %29 = arith.truncf %28 : vector<10x8xf32> to vector<10x8xbf16>
    %30 = vector.extract_strided_slice %29 {offsets = [0, 0], sizes = [8, 8], strides = [1, 1]} : vector<10x8xbf16> to vector<8x8xbf16>
    %c0_12 = arith.constant 0 : index
    %c0_13 = arith.constant 0 : index
    %c0_14 = arith.constant 0 : index
    %31 = vector.load %arg5[%c0_12, %c0_13, %c0_14] : memref<9x8x128xbf16, #tpu.memory_space<vmem>>, vector<1x8x128xbf16>
    %32 = vector.shape_cast %31 : vector<1x8x128xbf16> to vector<8x128xbf16>
    %cst_15 = arith.constant dense<0.000000e+00> : vector<8x128xf32>
    %33 = tpu.matmul %30, %32, %cst_15 {dimension_numbers = #tpu.dot_dimension_numbers<[1], [0], [0], [1], [0, 0, 1, 1], [], []>} : vector<8x8xbf16>, vector<8x128xbf16>, vector<8x128xf32> -> vector<8x128xf32>
    %34 = arith.addf %0, %33 : vector<8x128xf32>
    %35 = vector.extract_strided_slice %29 {offsets = [1, 0], sizes = [8, 8], strides = [1, 1]} : vector<10x8xbf16> to vector<8x8xbf16>
    %c1 = arith.constant 1 : index
    %c0_16 = arith.constant 0 : index
    %c0_17 = arith.constant 0 : index
    %36 = vector.load %arg5[%c1, %c0_16, %c0_17] : memref<9x8x128xbf16, #tpu.memory_space<vmem>>, vector<1x8x128xbf16>
    %37 = vector.shape_cast %36 : vector<1x8x128xbf16> to vector<8x128xbf16>
    %cst_18 = arith.constant dense<0.000000e+00> : vector<8x128xf32>
    %38 = tpu.matmul %35, %37, %cst_18 {dimension_numbers = #tpu.dot_dimension_numbers<[1], [0], [0], [1], [0, 0, 1, 1], [], []>} : vector<8x8xbf16>, vector<8x128xbf16>, vector<8x128xf32> -> vector<8x128xf32>
    %39 = arith.addf %34, %38 : vector<8x128xf32>
    %40 = vector.extract_strided_slice %29 {offsets = [2, 0], sizes = [8, 8], strides = [1, 1]} : vector<10x8xbf16> to vector<8x8xbf16>
    %c2 = arith.constant 2 : index
    %c0_19 = arith.constant 0 : index
    %c0_20 = arith.constant 0 : index
    %41 = vector.load %arg5[%c2, %c0_19, %c0_20] : memref<9x8x128xbf16, #tpu.memory_space<vmem>>, vector<1x8x128xbf16>
    %42 = vector.shape_cast %41 : vector<1x8x128xbf16> to vector<8x128xbf16>
    %cst_21 = arith.constant dense<0.000000e+00> : vector<8x128xf32>
    %43 = tpu.matmul %40, %42, %cst_21 {dimension_numbers = #tpu.dot_dimension_numbers<[1], [0], [0], [1], [0, 0, 1, 1], [], []>} : vector<8x8xbf16>, vector<8x128xbf16>, vector<8x128xf32> -> vector<8x128xf32>
    %44 = arith.addf %39, %43 : vector<8x128xf32>
    %c0_22 = arith.constant 0 : index
    %c0_23 = arith.constant 0 : index
    %c0_24 = arith.constant 0 : index
    %c0_25 = arith.constant 0 : index
    %45 = vector.load %arg3[%c0_22, %c0_23, %c0_24, %c0_25] : memref<1x1x10x8xbf16, #tpu.memory_space<vmem>>, vector<1x1x10x8xbf16>
    %46 = vector.shape_cast %45 : vector<1x1x10x8xbf16> to vector<10x8xbf16>
    %c1_i32_26 = arith.constant 1 : i32
    %47 = arith.addi %arg1, %c1_i32_26 : i32
    %c1_i32_27 = arith.constant 1 : i32
    %48 = arith.cmpi sge, %47, %c1_i32_27 : i32
    %c1_i32_28 = arith.constant 1 : i32
    %49 = arith.addi %arg1, %c1_i32_28 : i32
    %c9_i32_29 = arith.constant 9 : i32
    %50 = arith.cmpi slt, %49, %c9_i32_29 : i32
    %51 = arith.andi %48, %50 : i1
    %52 = arith.extf %46 : vector<10x8xbf16> to vector<10x8xf32>
    %53 = vector.broadcast %1 : vector<1x8xf32> to vector<10x8xf32>
    %54 = arith.mulf %52, %53 : vector<10x8xf32>
    %55 = vector.broadcast %2 : vector<1x8xf32> to vector<10x8xf32>
    %56 = arith.addf %54, %55 : vector<10x8xf32>
    %cst_30 = arith.constant 0.000000e+00 : f32
    %57 = vector.broadcast %cst_30 : f32 to vector<10x8xf32>
    %58 = arith.maximumf %56, %57 : vector<10x8xf32>
    %59 = vector.broadcast %51 : i1 to vector<10x1xi1>
    %60 = arith.andi %59, %8 : vector<10x1xi1>
    %cst_31 = arith.constant 0.000000e+00 : f32
    %61 = vector.shape_cast %60 : vector<10x1xi1> to vector<10x1xi1>
    %62 = vector.broadcast %61 : vector<10x1xi1> to vector<10x8xi1>
    %63 = vector.broadcast %cst_31 : f32 to vector<10x8xf32>
    %64 = arith.select %62, %58, %63 : vector<10x8xi1>, vector<10x8xf32>
    %65 = arith.truncf %64 : vector<10x8xf32> to vector<10x8xbf16>
    %66 = vector.extract_strided_slice %65 {offsets = [0, 0], sizes = [8, 8], strides = [1, 1]} : vector<10x8xbf16> to vector<8x8xbf16>
    %c3 = arith.constant 3 : index
    %c0_32 = arith.constant 0 : index
    %c0_33 = arith.constant 0 : index
    %67 = vector.load %arg5[%c3, %c0_32, %c0_33] : memref<9x8x128xbf16, #tpu.memory_space<vmem>>, vector<1x8x128xbf16>
    %68 = vector.shape_cast %67 : vector<1x8x128xbf16> to vector<8x128xbf16>
    %cst_34 = arith.constant dense<0.000000e+00> : vector<8x128xf32>
    %69 = tpu.matmul %66, %68, %cst_34 {dimension_numbers = #tpu.dot_dimension_numbers<[1], [0], [0], [1], [0, 0, 1, 1], [], []>} : vector<8x8xbf16>, vector<8x128xbf16>, vector<8x128xf32> -> vector<8x128xf32>
    %70 = arith.addf %44, %69 : vector<8x128xf32>
    %71 = vector.extract_strided_slice %65 {offsets = [1, 0], sizes = [8, 8], strides = [1, 1]} : vector<10x8xbf16> to vector<8x8xbf16>
    %c4 = arith.constant 4 : index
    %c0_35 = arith.constant 0 : index
    %c0_36 = arith.constant 0 : index
    %72 = vector.load %arg5[%c4, %c0_35, %c0_36] : memref<9x8x128xbf16, #tpu.memory_space<vmem>>, vector<1x8x128xbf16>
    %73 = vector.shape_cast %72 : vector<1x8x128xbf16> to vector<8x128xbf16>
    %cst_37 = arith.constant dense<0.000000e+00> : vector<8x128xf32>
    %74 = tpu.matmul %71, %73, %cst_37 {dimension_numbers = #tpu.dot_dimension_numbers<[1], [0], [0], [1], [0, 0, 1, 1], [], []>} : vector<8x8xbf16>, vector<8x128xbf16>, vector<8x128xf32> -> vector<8x128xf32>
    %75 = arith.addf %70, %74 : vector<8x128xf32>
    %76 = vector.extract_strided_slice %65 {offsets = [2, 0], sizes = [8, 8], strides = [1, 1]} : vector<10x8xbf16> to vector<8x8xbf16>
    %c5 = arith.constant 5 : index
    %c0_38 = arith.constant 0 : index
    %c0_39 = arith.constant 0 : index
    %77 = vector.load %arg5[%c5, %c0_38, %c0_39] : memref<9x8x128xbf16, #tpu.memory_space<vmem>>, vector<1x8x128xbf16>
    %78 = vector.shape_cast %77 : vector<1x8x128xbf16> to vector<8x128xbf16>
    %cst_40 = arith.constant dense<0.000000e+00> : vector<8x128xf32>
    %79 = tpu.matmul %76, %78, %cst_40 {dimension_numbers = #tpu.dot_dimension_numbers<[1], [0], [0], [1], [0, 0, 1, 1], [], []>} : vector<8x8xbf16>, vector<8x128xbf16>, vector<8x128xf32> -> vector<8x128xf32>
    %80 = arith.addf %75, %79 : vector<8x128xf32>
    %c0_41 = arith.constant 0 : index
    %c0_42 = arith.constant 0 : index
    %c0_43 = arith.constant 0 : index
    %c0_44 = arith.constant 0 : index
    %81 = vector.load %arg4[%c0_41, %c0_42, %c0_43, %c0_44] : memref<1x1x10x8xbf16, #tpu.memory_space<vmem>>, vector<1x1x10x8xbf16>
    %82 = vector.shape_cast %81 : vector<1x1x10x8xbf16> to vector<10x8xbf16>
    %c2_i32 = arith.constant 2 : i32
    %83 = arith.addi %arg1, %c2_i32 : i32
    %c1_i32_45 = arith.constant 1 : i32
    %84 = arith.cmpi sge, %83, %c1_i32_45 : i32
    %c2_i32_46 = arith.constant 2 : i32
    %85 = arith.addi %arg1, %c2_i32_46 : i32
    %c9_i32_47 = arith.constant 9 : i32
    %86 = arith.cmpi slt, %85, %c9_i32_47 : i32
    %87 = arith.andi %84, %86 : i1
    %88 = arith.extf %82 : vector<10x8xbf16> to vector<10x8xf32>
    %89 = vector.broadcast %1 : vector<1x8xf32> to vector<10x8xf32>
    %90 = arith.mulf %88, %89 : vector<10x8xf32>
    %91 = vector.broadcast %2 : vector<1x8xf32> to vector<10x8xf32>
    %92 = arith.addf %90, %91 : vector<10x8xf32>
    %cst_48 = arith.constant 0.000000e+00 : f32
    %93 = vector.broadcast %cst_48 : f32 to vector<10x8xf32>
    %94 = arith.maximumf %92, %93 : vector<10x8xf32>
    %95 = vector.broadcast %87 : i1 to vector<10x1xi1>
    %96 = arith.andi %95, %8 : vector<10x1xi1>
    %cst_49 = arith.constant 0.000000e+00 : f32
    %97 = vector.shape_cast %96 : vector<10x1xi1> to vector<10x1xi1>
    %98 = vector.broadcast %97 : vector<10x1xi1> to vector<10x8xi1>
    %99 = vector.broadcast %cst_49 : f32 to vector<10x8xf32>
    %100 = arith.select %98, %94, %99 : vector<10x8xi1>, vector<10x8xf32>
    %101 = arith.truncf %100 : vector<10x8xf32> to vector<10x8xbf16>
    %102 = vector.extract_strided_slice %101 {offsets = [0, 0], sizes = [8, 8], strides = [1, 1]} : vector<10x8xbf16> to vector<8x8xbf16>
    %c6 = arith.constant 6 : index
    %c0_50 = arith.constant 0 : index
    %c0_51 = arith.constant 0 : index
    %103 = vector.load %arg5[%c6, %c0_50, %c0_51] : memref<9x8x128xbf16, #tpu.memory_space<vmem>>, vector<1x8x128xbf16>
    %104 = vector.shape_cast %103 : vector<1x8x128xbf16> to vector<8x128xbf16>
    %cst_52 = arith.constant dense<0.000000e+00> : vector<8x128xf32>
    %105 = tpu.matmul %102, %104, %cst_52 {dimension_numbers = #tpu.dot_dimension_numbers<[1], [0], [0], [1], [0, 0, 1, 1], [], []>} : vector<8x8xbf16>, vector<8x128xbf16>, vector<8x128xf32> -> vector<8x128xf32>
    %106 = arith.addf %80, %105 : vector<8x128xf32>
    %107 = vector.extract_strided_slice %101 {offsets = [1, 0], sizes = [8, 8], strides = [1, 1]} : vector<10x8xbf16> to vector<8x8xbf16>
    %c7 = arith.constant 7 : index
    %c0_53 = arith.constant 0 : index
    %c0_54 = arith.constant 0 : index
    %108 = vector.load %arg5[%c7, %c0_53, %c0_54] : memref<9x8x128xbf16, #tpu.memory_space<vmem>>, vector<1x8x128xbf16>
    %109 = vector.shape_cast %108 : vector<1x8x128xbf16> to vector<8x128xbf16>
    %cst_55 = arith.constant dense<0.000000e+00> : vector<8x128xf32>
    %110 = tpu.matmul %107, %109, %cst_55 {dimension_numbers = #tpu.dot_dimension_numbers<[1], [0], [0], [1], [0, 0, 1, 1], [], []>} : vector<8x8xbf16>, vector<8x128xbf16>, vector<8x128xf32> -> vector<8x128xf32>
    %111 = arith.addf %106, %110 : vector<8x128xf32>
    %112 = vector.extract_strided_slice %101 {offsets = [2, 0], sizes = [8, 8], strides = [1, 1]} : vector<10x8xbf16> to vector<8x8xbf16>
    %c8 = arith.constant 8 : index
    %c0_56 = arith.constant 0 : index
    %c0_57 = arith.constant 0 : index
    %113 = vector.load %arg5[%c8, %c0_56, %c0_57] : memref<9x8x128xbf16, #tpu.memory_space<vmem>>, vector<1x8x128xbf16>
    %114 = vector.shape_cast %113 : vector<1x8x128xbf16> to vector<8x128xbf16>
    %cst_58 = arith.constant dense<0.000000e+00> : vector<8x128xf32>
    %115 = tpu.matmul %112, %114, %cst_58 {dimension_numbers = #tpu.dot_dimension_numbers<[1], [0], [0], [1], [0, 0, 1, 1], [], []>} : vector<8x8xbf16>, vector<8x128xbf16>, vector<8x128xf32> -> vector<8x128xf32>
    %116 = arith.addf %111, %115 : vector<8x128xf32>
    %117 = vector.extract_strided_slice %116 {offsets = [0, 0], sizes = [8, 8], strides = [1, 1]} : vector<8x128xf32> to vector<8x8xf32>
    %118 = arith.truncf %117 : vector<8x8xf32> to vector<8x8xbf16>
    %c0_59 = arith.constant 0 : index
    %c0_60 = arith.constant 0 : index
    %c0_61 = arith.constant 0 : index
    %c0_62 = arith.constant 0 : index
    %119 = vector.load %arg10[%c0_59, %c0_60, %c0_61, %c0_62] : memref<1x1x8x8xbf16, #tpu.memory_space<vmem>>, vector<1x1x8x8xbf16>
    %120 = vector.shape_cast %119 : vector<1x1x8x8xbf16> to vector<8x8xbf16>
    %121 = vector.shape_cast %118 : vector<8x8xbf16> to vector<1x1x8x8xbf16>
    tpu.vector_store %arg10[%c0_59, %c0_60, %c0_61, %c0_62], %121 {strides = array<i32>} : memref<1x1x8x8xbf16, #tpu.memory_space<vmem>>, vector<1x1x8x8xbf16>,
    %cst_63 = arith.constant dense<0.000000e+00> : vector<8xf32>
    %122 = vector.multi_reduction <add>, %117, %cst_63 [0] : vector<8x8xf32> to vector<8xf32>
    %123 = vector.shape_cast %122 : vector<8xf32> to vector<1x8xf32>
    %124 = arith.mulf %117, %117 : vector<8x8xf32>
    %cst_64 = arith.constant dense<0.000000e+00> : vector<8xf32>
    %125 = vector.multi_reduction <add>, %124, %cst_64 [0] : vector<8x8xf32> to vector<8xf32>
    %126 = vector.shape_cast %125 : vector<8xf32> to vector<1x8xf32>
    %127 = tpu.concatenate %123, %126 in 0 : vector<1x8xf32>, vector<1x8xf32> -> vector<2x8xf32>
    %c0_i32_65 = arith.constant 0 : i32
    %128 = arith.cmpi eq, %arg1, %c0_i32_65 : i32
    %129 = arith.extui %128 : i1 to i32
    %c0_i32_66 = arith.constant 0 : i32
    %130 = arith.cmpi ne, %129, %c0_i32_66 : i32
    scf.if %130 {
      %cst_94 = arith.constant 0.000000e+00 : f32
      %161 = vector.broadcast %cst_94 : f32 to vector<2x8xf32>
      %c0_95 = arith.constant 0 : index
      %c0_96 = arith.constant 0 : index
      %c0_97 = arith.constant 0 : index
      %162 = vector.load %arg11[%c0_95, %c0_96, %c0_97] : memref<1x2x8xf32, #tpu.memory_space<vmem>>, vector<1x2x8xf32>
      %163 = vector.shape_cast %162 : vector<1x2x8xf32> to vector<2x8xf32>
      %164 = vector.shape_cast %161 : vector<2x8xf32> to vector<1x2x8xf32>
      tpu.vector_store %arg11[%c0_95, %c0_96, %c0_97], %164 {strides = array<i32>} : memref<1x2x8xf32, #tpu.memory_space<vmem>>, vector<1x2x8xf32>,
    } else {
    }
    %c0_67 = arith.constant 0 : index
    %c0_68 = arith.constant 0 : index
    %c0_69 = arith.constant 0 : index
    %131 = vector.load %arg11[%c0_67, %c0_68, %c0_69] : memref<1x2x8xf32, #tpu.memory_space<vmem>>, vector<1x2x8xf32>
    %132 = vector.shape_cast %131 : vector<1x2x8xf32> to vector<2x8xf32>
    %133 = arith.addf %132, %127 : vector<2x8xf32>
    %c0_70 = arith.constant 0 : index
    %c0_71 = arith.constant 0 : index
    %c0_72 = arith.constant 0 : index
    %134 = vector.load %arg11[%c0_70, %c0_71, %c0_72] : memref<1x2x8xf32, #tpu.memory_space<vmem>>, vector<1x2x8xf32>
    %135 = vector.shape_cast %134 : vector<1x2x8xf32> to vector<2x8xf32>
    %136 = vector.shape_cast %133 : vector<2x8xf32> to vector<1x2x8xf32>
    tpu.vector_store %arg11[%c0_70, %c0_71, %c0_72], %136 {strides = array<i32>} : memref<1x2x8xf32, #tpu.memory_space<vmem>>, vector<1x2x8xf32>,
    %c0_73 = arith.constant 0 : index
    %c0_74 = arith.constant 0 : index
    %c0_75 = arith.constant 0 : index
    %c0_76 = arith.constant 0 : index
    %137 = vector.load %arg8[%c0_73, %c0_74, %c0_75, %c0_76] : memref<1x1x8x4xbf16, #tpu.memory_space<vmem>>, vector<1x1x8x4xbf16>
    %138 = vector.shape_cast %137 : vector<1x1x8x4xbf16> to vector<8x4xbf16>
    %c0_77 = arith.constant 0 : index
    %c0_78 = arith.constant 0 : index
    %139 = vector.load %arg9[%c0_77, %c0_78] : memref<4x128xbf16, #tpu.memory_space<vmem>>, vector<4x128xbf16>
    %cst_79 = arith.constant dense<0.000000e+00> : vector<8x128xf32>
    %140 = tpu.matmul %138, %139, %cst_79 {dimension_numbers = #tpu.dot_dimension_numbers<[1], [0], [0], [1], [0, 0, 1, 1], [], []>} : vector<8x4xbf16>, vector<4x128xbf16>, vector<8x128xf32> -> vector<8x128xf32>
    %141 = vector.extract_strided_slice %140 {offsets = [0, 0], sizes = [8, 8], strides = [1, 1]} : vector<8x128xf32> to vector<8x8xf32>
    %142 = arith.truncf %141 : vector<8x8xf32> to vector<8x8xbf16>
    %c0_80 = arith.constant 0 : index
    %c0_81 = arith.constant 0 : index
    %c0_82 = arith.constant 0 : index
    %c0_83 = arith.constant 0 : index
    %143 = vector.load %arg12[%c0_80, %c0_81, %c0_82, %c0_83] : memref<1x1x8x8xbf16, #tpu.memory_space<vmem>>, vector<1x1x8x8xbf16>
    %144 = vector.shape_cast %143 : vector<1x1x8x8xbf16> to vector<8x8xbf16>
    %145 = vector.shape_cast %142 : vector<8x8xbf16> to vector<1x1x8x8xbf16>
    tpu.vector_store %arg12[%c0_80, %c0_81, %c0_82, %c0_83], %145 {strides = array<i32>} : memref<1x1x8x8xbf16, #tpu.memory_space<vmem>>, vector<1x1x8x8xbf16>,
    %cst_84 = arith.constant dense<0.000000e+00> : vector<8xf32>
    %146 = vector.multi_reduction <add>, %141, %cst_84 [0] : vector<8x8xf32> to vector<8xf32>
    %147 = vector.shape_cast %146 : vector<8xf32> to vector<1x8xf32>
    %148 = arith.mulf %141, %141 : vector<8x8xf32>
    %cst_85 = arith.constant dense<0.000000e+00> : vector<8xf32>
    %149 = vector.multi_reduction <add>, %148, %cst_85 [0] : vector<8x8xf32> to vector<8xf32>
    %150 = vector.shape_cast %149 : vector<8xf32> to vector<1x8xf32>
    %151 = tpu.concatenate %147, %150 in 0 : vector<1x8xf32>, vector<1x8xf32> -> vector<2x8xf32>
    %c0_i32_86 = arith.constant 0 : i32
    %152 = arith.cmpi eq, %arg1, %c0_i32_86 : i32
    %153 = arith.extui %152 : i1 to i32
    %c0_i32_87 = arith.constant 0 : i32
    %154 = arith.cmpi ne, %153, %c0_i32_87 : i32
    scf.if %154 {
      %cst_94 = arith.constant 0.000000e+00 : f32
      %161 = vector.broadcast %cst_94 : f32 to vector<2x8xf32>
      %c0_95 = arith.constant 0 : index
      %c0_96 = arith.constant 0 : index
      %c0_97 = arith.constant 0 : index
      %162 = vector.load %arg13[%c0_95, %c0_96, %c0_97] : memref<1x2x8xf32, #tpu.memory_space<vmem>>, vector<1x2x8xf32>
      %163 = vector.shape_cast %162 : vector<1x2x8xf32> to vector<2x8xf32>
      %164 = vector.shape_cast %161 : vector<2x8xf32> to vector<1x2x8xf32>
      tpu.vector_store %arg13[%c0_95, %c0_96, %c0_97], %164 {strides = array<i32>} : memref<1x2x8xf32, #tpu.memory_space<vmem>>, vector<1x2x8xf32>,
    } else {
    }
    %c0_88 = arith.constant 0 : index
    %c0_89 = arith.constant 0 : index
    %c0_90 = arith.constant 0 : index
    %155 = vector.load %arg13[%c0_88, %c0_89, %c0_90] : memref<1x2x8xf32, #tpu.memory_space<vmem>>, vector<1x2x8xf32>
    %156 = vector.shape_cast %155 : vector<1x2x8xf32> to vector<2x8xf32>
    %157 = arith.addf %156, %151 : vector<2x8xf32>
    %c0_91 = arith.constant 0 : index
    %c0_92 = arith.constant 0 : index
    %c0_93 = arith.constant 0 : index
    %158 = vector.load %arg13[%c0_91, %c0_92, %c0_93] : memref<1x2x8xf32, #tpu.memory_space<vmem>>, vector<1x2x8xf32>
    %159 = vector.shape_cast %158 : vector<1x2x8xf32> to vector<2x8xf32>
    %160 = vector.shape_cast %157 : vector<2x8xf32> to vector<1x2x8xf32>
    tpu.vector_store %arg13[%c0_91, %c0_92, %c0_93], %160 {strides = array<i32>} : memref<1x2x8xf32, #tpu.memory_space<vmem>>, vector<1x2x8xf32>,
    return
  }
  func.func @transform_0(%arg0: i32, %arg1: i32) -> (i32, i32, i32, i32) {
    %c0_i32 = arith.constant 0 : i32
    %0 = arith.addi %arg1, %c0_i32 : i32
    %c0_i32_0 = arith.constant 0 : i32
    %c0_i32_1 = arith.constant 0 : i32
    %c0_i32_2 = arith.constant 0 : i32
    return %arg0, %0, %c0_i32_0, %c0_i32_1 : i32, i32, i32, i32
  }
  func.func @transform_1(%arg0: i32, %arg1: i32) -> (i32, i32, i32, i32) {
    %c1_i32 = arith.constant 1 : i32
    %0 = arith.addi %arg1, %c1_i32 : i32
    %c0_i32 = arith.constant 0 : i32
    %c0_i32_0 = arith.constant 0 : i32
    %c0_i32_1 = arith.constant 0 : i32
    return %arg0, %0, %c0_i32, %c0_i32_0 : i32, i32, i32, i32
  }
  func.func @transform_2(%arg0: i32, %arg1: i32) -> (i32, i32, i32, i32) {
    %c2_i32 = arith.constant 2 : i32
    %0 = arith.addi %arg1, %c2_i32 : i32
    %c0_i32 = arith.constant 0 : i32
    %c0_i32_0 = arith.constant 0 : i32
    %c0_i32_1 = arith.constant 0 : i32
    return %arg0, %0, %c0_i32, %c0_i32_0 : i32, i32, i32, i32
  }
  func.func @transform_3(%arg0: i32, %arg1: i32) -> (i32, i32, i32) {
    %c0_i32 = arith.constant 0 : i32
    %c0_i32_0 = arith.constant 0 : i32
    %c0_i32_1 = arith.constant 0 : i32
    %c0_i32_2 = arith.constant 0 : i32
    return %c0_i32, %c0_i32_0, %c0_i32_1 : i32, i32, i32
  }
  func.func @transform_4(%arg0: i32, %arg1: i32) -> (i32, i32) {
    %c0_i32 = arith.constant 0 : i32
    %c0_i32_0 = arith.constant 0 : i32
    %c0_i32_1 = arith.constant 0 : i32
    return %c0_i32, %c0_i32_0 : i32, i32
  }
  func.func @transform_5(%arg0: i32, %arg1: i32) -> (i32, i32) {
    %c0_i32 = arith.constant 0 : i32
    %c0_i32_0 = arith.constant 0 : i32
    %c0_i32_1 = arith.constant 0 : i32
    return %c0_i32, %c0_i32_0 : i32, i32
  }
  func.func @transform_6(%arg0: i32, %arg1: i32) -> (i32, i32, i32, i32) {
    %c0_i32 = arith.constant 0 : i32
    %c0_i32_0 = arith.constant 0 : i32
    %c0_i32_1 = arith.constant 0 : i32
    return %arg0, %arg1, %c0_i32, %c0_i32_0 : i32, i32, i32, i32
  }
  func.func @transform_7(%arg0: i32, %arg1: i32) -> (i32, i32) {
    %c0_i32 = arith.constant 0 : i32
    %c0_i32_0 = arith.constant 0 : i32
    %c0_i32_1 = arith.constant 0 : i32
    return %c0_i32, %c0_i32_0 : i32, i32
  }
  func.func @transform_8(%arg0: i32, %arg1: i32) -> (i32, i32, i32, i32) {
    %c0_i32 = arith.constant 0 : i32
    %c0_i32_0 = arith.constant 0 : i32
    %c0_i32_1 = arith.constant 0 : i32
    return %arg0, %arg1, %c0_i32, %c0_i32_0 : i32, i32, i32, i32
  }
  func.func @transform_9(%arg0: i32, %arg1: i32) -> (i32, i32, i32) {
    %c0_i32 = arith.constant 0 : i32
    %c0_i32_0 = arith.constant 0 : i32
    %c0_i32_1 = arith.constant 0 : i32
    return %arg0, %c0_i32, %c0_i32_0 : i32, i32, i32
  }
  func.func @transform_10(%arg0: i32, %arg1: i32) -> (i32, i32, i32, i32) {
    %c0_i32 = arith.constant 0 : i32
    %c0_i32_0 = arith.constant 0 : i32
    %c0_i32_1 = arith.constant 0 : i32
    return %arg0, %arg1, %c0_i32, %c0_i32_0 : i32, i32, i32, i32
  }
  func.func @transform_11(%arg0: i32, %arg1: i32) -> (i32, i32, i32) {
    %c0_i32 = arith.constant 0 : i32
    %c0_i32_0 = arith.constant 0 : i32
    %c0_i32_1 = arith.constant 0 : i32
    return %arg0, %c0_i32, %c0_i32_0 : i32, i32, i32
  }
}

module attributes {stable_mosaic.version = 11 : i64} {
  func.func @_bn_relu_kernel(%arg0: i32, %arg1: memref<64x8xbf16, #tpu.memory_space<vmem>>, %arg2: memref<1x8xf32, #tpu.memory_space<vmem>>, %arg3: memref<1x8xf32, #tpu.memory_space<vmem>>, %arg4: memref<64x8xbf16, #tpu.memory_space<vmem>>, %arg5: memref<1x8xf32, #tpu.memory_space<vmem>>, %arg6: memref<1x8xf32, #tpu.memory_space<vmem>>, %arg7: memref<64x8xf32, #tpu.memory_space<vmem>>) attributes {dimension_semantics = [#tpu.dimension_semantics<parallel>], iteration_bounds = array<i64: 2>, scalar_prefetch = 0 : i64, scratch_operands = 0 : i64, tpu.core_type = #tpu.core_type<tc>, window_params = [{transform_indices = @transform_0, window_bounds = array<i64: 64, 8>}, {pipeline_mode = #tpu.pipeline_mode<synchronous>, transform_indices = @transform_1, window_bounds = array<i64: 1, 8>}, {pipeline_mode = #tpu.pipeline_mode<synchronous>, transform_indices = @transform_2, window_bounds = array<i64: 1, 8>}, {transform_indices = @transform_3, window_bounds = array<i64: 64, 8>}, {pipeline_mode = #tpu.pipeline_mode<synchronous>, transform_indices = @transform_4, window_bounds = array<i64: 1, 8>}, {pipeline_mode = #tpu.pipeline_mode<synchronous>, transform_indices = @transform_5, window_bounds = array<i64: 1, 8>}, {transform_indices = @transform_6, window_bounds = array<i64: 64, 8>}]} {
    %c0 = arith.constant 0 : index
    %c0_0 = arith.constant 0 : index
    %0 = vector.load %arg1[%c0, %c0_0] : memref<64x8xbf16, #tpu.memory_space<vmem>>, vector<64x8xbf16>
    %1 = arith.extf %0 : vector<64x8xbf16> to vector<64x8xf32>
    %c0_1 = arith.constant 0 : index
    %c0_2 = arith.constant 0 : index
    %2 = vector.load %arg2[%c0_1, %c0_2] : memref<1x8xf32, #tpu.memory_space<vmem>>, vector<1x8xf32>
    %3 = vector.broadcast %2 : vector<1x8xf32> to vector<64x8xf32>
    %4 = arith.mulf %1, %3 : vector<64x8xf32>
    %c0_3 = arith.constant 0 : index
    %c0_4 = arith.constant 0 : index
    %5 = vector.load %arg3[%c0_3, %c0_4] : memref<1x8xf32, #tpu.memory_space<vmem>>, vector<1x8xf32>
    %6 = vector.broadcast %5 : vector<1x8xf32> to vector<64x8xf32>
    %7 = arith.addf %4, %6 : vector<64x8xf32>
    %c0_5 = arith.constant 0 : index
    %c0_6 = arith.constant 0 : index
    %8 = vector.load %arg4[%c0_5, %c0_6] : memref<64x8xbf16, #tpu.memory_space<vmem>>, vector<64x8xbf16>
    %9 = arith.extf %8 : vector<64x8xbf16> to vector<64x8xf32>
    %c0_7 = arith.constant 0 : index
    %c0_8 = arith.constant 0 : index
    %10 = vector.load %arg5[%c0_7, %c0_8] : memref<1x8xf32, #tpu.memory_space<vmem>>, vector<1x8xf32>
    %11 = vector.broadcast %10 : vector<1x8xf32> to vector<64x8xf32>
    %12 = arith.mulf %9, %11 : vector<64x8xf32>
    %13 = arith.addf %7, %12 : vector<64x8xf32>
    %c0_9 = arith.constant 0 : index
    %c0_10 = arith.constant 0 : index
    %14 = vector.load %arg6[%c0_9, %c0_10] : memref<1x8xf32, #tpu.memory_space<vmem>>, vector<1x8xf32>
    %15 = vector.broadcast %14 : vector<1x8xf32> to vector<64x8xf32>
    %16 = arith.addf %13, %15 : vector<64x8xf32>
    %cst = arith.constant 0.000000e+00 : f32
    %17 = vector.broadcast %cst : f32 to vector<64x8xf32>
    %18 = arith.maximumf %16, %17 : vector<64x8xf32>
    %c0_11 = arith.constant 0 : index
    %c0_12 = arith.constant 0 : index
    %19 = vector.load %arg7[%c0_11, %c0_12] : memref<64x8xf32, #tpu.memory_space<vmem>>, vector<64x8xf32>
    tpu.vector_store %arg7[%c0_11, %c0_12], %18 {strides = array<i32>} : memref<64x8xf32, #tpu.memory_space<vmem>>, vector<64x8xf32>,
    return
  }
  func.func @transform_0(%arg0: i32) -> (i32, i32) {
    %c0_i32 = arith.constant 0 : i32
    %c0_i32_0 = arith.constant 0 : i32
    return %arg0, %c0_i32 : i32, i32
  }
  func.func @transform_1(%arg0: i32) -> (i32, i32) {
    %c0_i32 = arith.constant 0 : i32
    %c0_i32_0 = arith.constant 0 : i32
    %c0_i32_1 = arith.constant 0 : i32
    return %c0_i32, %c0_i32_0 : i32, i32
  }
  func.func @transform_2(%arg0: i32) -> (i32, i32) {
    %c0_i32 = arith.constant 0 : i32
    %c0_i32_0 = arith.constant 0 : i32
    %c0_i32_1 = arith.constant 0 : i32
    return %c0_i32, %c0_i32_0 : i32, i32
  }
  func.func @transform_3(%arg0: i32) -> (i32, i32) {
    %c0_i32 = arith.constant 0 : i32
    %c0_i32_0 = arith.constant 0 : i32
    return %arg0, %c0_i32 : i32, i32
  }
  func.func @transform_4(%arg0: i32) -> (i32, i32) {
    %c0_i32 = arith.constant 0 : i32
    %c0_i32_0 = arith.constant 0 : i32
    %c0_i32_1 = arith.constant 0 : i32
    return %c0_i32, %c0_i32_0 : i32, i32
  }
  func.func @transform_5(%arg0: i32) -> (i32, i32) {
    %c0_i32 = arith.constant 0 : i32
    %c0_i32_0 = arith.constant 0 : i32
    %c0_i32_1 = arith.constant 0 : i32
    return %c0_i32, %c0_i32_0 : i32, i32
  }
  func.func @transform_6(%arg0: i32) -> (i32, i32) {
    %c0_i32 = arith.constant 0 : i32
    %c0_i32_0 = arith.constant 0 : i32
    return %arg0, %c0_i32 : i32, i32
  }
}

</mosaic_0001>

<bundles_post_ra>
// kernel: basic_block_forward.3
= control target key start
LH: loop header
LB: loop body
LE: loop exit
PB: predicated region body
PF: predicated region fallthrough
CT: control target
= control target key end

     0   :  { %s610_s12 = smov 0   ;;  %s678_s0 = inlined_call_operand.vmem [shape: bf16[128,36], index: 0, kind: input, shape index: {}]   ;;  %s679_s1 = inlined_call_operand.vmem [shape: bf16[36,128], index: 1, kind: input, shape index: {}]   ;;  %s680_s2 = inlined_call_operand.vmem [shape: bf16[128,8], index: 2, kind: output, shape index: {0}]   ;;  %s681_s3 = inlined_call_operand.vmem [shape: f32[2,2,8], index: 3, kind: output, shape index: {1}]  }
   0x1 LB: > { %s616_s13 = sadd.s32 4294967295, %s588_s12   ;;  %p503_p0 = scmp.ge.s32.totalorder %s588_s12, 1  ;;  %s588_s12 = sphi %s610_s12, %s14_s12  }
   0x2   : > { %p141_p1 = scmp.lt.s32.totalorder %s588_s12, 3 }
   0x4   : > { %p142_p2 = pnand %p503_p0, %p141_p1 }
   0x5   : > { %v575_v0 = vld [vmem:[%s679_s1] sm:$0xff] (!%p142_p2)   ;;  %v576_v1 = vld [vmem:[%s679_s1 + $0x8] sm:$0xff] (!%p142_p2)   ;;  %s504_s18 = sshll.u32 (!%p142_p2), %s616_s13, 3  ;;  %v577_v2 = vld [vmem:[%s679_s1 + $0x10] ss:$0 sps:$4 sm:$0x33] (!%p142_p2)  }
   0x6   : > { %145 = sbr.rel (%p142_p2) target bundleno = 264 (0x108), region = 28  ;;  %545 = vmatprep.subr.bf16.mxu0 (!%p142_p2), %v575_v0  ;;  %559 = vmatprep.subr.bf16.mxu1 (!%p142_p2), %v575_v0  ;;  %p170_p3 = scmp.lt.s32.totalorder (!%p142_p2), %s504_s18, 15  ;;  %vm247_vm0 = vcmask (!%p142_p2), 1041408   ;;  %vm234_vm1 = vcmask (!%p142_p2), 293888   ;;  %vm348_vm2 = vcmask (!%p142_p2), 60416   ;;  %vm357_vm3 = vcmask (!%p142_p2), 64512  }
   0x7   : > { %546 = vmatpush3.bf16.msra.mxu0 (!%p142_p2), %v575_v0  ;;  %562 = vmatpush3.bf16.msra.mxu1 (!%p142_p2), %v575_v0  ;;  %v249_v3 = vsel (!%p142_p2), %vm247_vm0, %v577_v2, 0  ;;  %p181_p4 = scmp.lt.s32.totalorder (!%p142_p2), %s616_s13, 1  ;;  %vm408_vm4 = vcmask (!%p142_p2), 1040384   ;;  %vm410_vm5 = vcmask (!%p142_p2), 58368  }
   0x8   : > { %547 = vmatprep.subr.bf16.mxu0 (!%p142_p2), %v576_v1  ;;  %560 = vmatprep.subr.bf16.mxu1 (!%p142_p2), %v576_v1 }
   0xb   : > { %548 = vmatpush3.bf16.msra.mxu0 (!%p142_p2), %v576_v1  ;;  %563 = vmatpush3.bf16.msra.mxu1 (!%p142_p2), %v576_v1 }
   0xc   : > { %565 = vmatprep.subr.msk.bf16.mxu0 (!%p142_p2), %vm247_vm0, %v577_v2  ;;  %566 = vmatprep.subr.msk.bf16.mxu1 (!%p142_p2), %vm247_vm0, %v577_v2 }
   0xd   : > { %s683_s18 = smov (!%p170_p3, %s504_s18), 15  ;;  %s685_s13 = smov (!%p181_p4, %s616_s13), 1 }
   0xe   : > { %s505_s21 = sshll.u32 %s683_s18, 2  ;;  %s508_s28 = sshll.u32 %s685_s13, 1 }
   0xf   : > { %s173_s24 = scalar_lea.vmem %s678_s0, %s505_s21  ;;  %550 = vmatpush3.bf16.msra.mxu0 %v249_v3  ;;  %564 = vmatpush3.bf16.msra.mxu1 %v249_v3  ;;  %s636_s27 = scalar_lea.vmem %s680_s2, %s505_s21 }
  0x10   : > { %v578_v4 = vld [vmem:[%s173_s24] sm:$0xff]   ;;  %v579_v5 = vld [vmem:[%s173_s24 + $0x8] sm:$0xff]   ;;  %v580_v6 = vld [vmem:[%s173_s24 + $0x10] sm:$0xff]   ;;  %s184_s4 = scalar_lea.vmem %s681_s3, %s508_s28 }
  0x11   : > { %551 = vmatprep.mubr.msk.bf16.mxu0 %vm234_vm1, %v578_v4  ;;  %v581_v7 = vld [vmem:[%s173_s24 + $0x18] sm:$0xff]   ;;  %555 = vmatprep.mubr.msk.bf16.mxu1 %vm234_vm1, %v580_v6 }
  0x12   : > { %552 = vmatmul.mubr.msk.bf16.vlgmr.msra.gmra.mrb[0].mxu0 %vm234_vm1, %v579_v5  ;;  %556 = vmatmul.mubr.msk.bf16.vlgmr.msra.gmra.mrb[0].mxu1 %vm234_vm1, %v581_v7 }
  0xe5   : > { %v553_v8 = vpop.f32.mrb[0].mxu0  ;;  %v557_v9 = vpop.f32.mrb[0].mxu1 }
  0xe6   : > { %v532_v10 = vpack.c.bf16 %v553_v8, %v553_v8  ;;  %v285_v11 = vpop.f32.mrb[1].mxu0  ;;  %v536_v12 = vpack.c.bf16 %v557_v9, %v557_v9  ;;  %v301_v13 = vpop.f32.mrb[1].mxu1  ;;  %v381_v18 = vmul.f32 %v553_v8, %v553_v8  ;;  %v361_v26 = vsel %vm357_vm3, %v553_v8, 0.0 }
  0xe7   : > { %v530_v14 = vpack.c.bf16 %v285_v11, %v285_v11  ;;  %v379_v15 = vmul.f32 %v285_v11, %v285_v11  ;;  %v554_v16 = vpop.f32.mrb[2].mxu0  ;;  %v558_v17 = vpop.f32.mrb[2].mxu1  ;;  %v358_v22 = vsel %vm357_vm3, %v285_v11, 0.0  ;;  %v534_v29 = vpack.c.bf16 %v301_v13, %v301_v13 }
  0xe8   : > { %351 = vst.msk [vmem:[%s636_s27 + $0x8] sm:$0xf] %vm348_vm2, %v532_v10  ;;  %v533_v19 = vpack.c.bf16 %v554_v16, %v554_v16  ;;  %v288_v20 = vpop.f32.mrb[3].mxu0  ;;  %355 = vst.msk [vmem:[%s636_s27 + $0x18] sm:$0xf] %vm348_vm2, %v536_v12  ;;  %v304_v21 = vpop.f32.mrb[3].mxu1  ;;  %v382_v27 = vmul.f32 %v554_v16, %v554_v16  ;;  %v383_v32 = vmul.f32 %v301_v13, %v301_v13 }
  0xe9   : > { %349 = vst.msk [vmem:[%s636_s27] sm:$0xf] %vm348_vm2, %v530_v14  ;;  %v531_v23 = vpack.c.bf16 %v288_v20, %v288_v20  ;;  %v359_v24 = vsel %vm357_vm3, %v288_v20, 0.0  ;;  %v380_v25 = vmul.f32 %v288_v20, %v288_v20  ;;  %v387_v30 = vsel %vm357_vm3, %v379_v15, 0.0  ;;  %353 = vst.msk [vmem:[%s636_s27 + $0x10] sm:$0xf] %vm348_vm2, %v534_v29 }
  0xea   : > { %352 = vst.msk [vmem:[%s636_s27 + $0xc] sm:$0xf] %vm348_vm2, %v533_v19  ;;  %v360_v28 = vadd.f32 %v359_v24, %v358_v22  ;;  %v537_v33 = vpack.c.bf16 %v558_v17, %v558_v17  ;;  %v390_v36 = vsel %vm357_vm3, %v381_v18, 0.0  ;;  %v363_v37 = vsel %vm357_vm3, %v554_v16, 0.0 }
  0xeb   : > { %350 = vst.msk [vmem:[%s636_s27 + $0x4] sm:$0xf] %vm348_vm2, %v531_v23  ;;  %v388_v31 = vsel %vm357_vm3, %v380_v25, 0.0  ;;  %v365_v38 = vsel %vm357_vm3, %v301_v13, 0.0  ;;  %v535_v39 = vpack.c.bf16 %v304_v21, %v304_v21  ;;  %v392_v42 = vsel %vm357_vm3, %v382_v27, 0.0 }
  0xec   : > { %v362_v34 = vadd.f32 %v361_v26, %v360_v28  ;;  %v389_v35 = vadd.f32 %v388_v31, %v387_v30  ;;  %356 = vst.msk [vmem:[%s636_s27 + $0x1c] sm:$0xf] %vm348_vm2, %v537_v33  ;;  %v394_v43 = vsel %vm357_vm3, %v383_v32, 0.0  ;;  %v384_v44 = vmul.f32 %v304_v21, %v304_v21 }
  0xed   : > { %354 = vst.msk [vmem:[%s636_s27 + $0x14] sm:$0xf] %vm348_vm2, %v535_v39  ;;  %v385_v47 = vmul.f32 %v557_v9, %v557_v9  ;;  %v367_v48 = vsel %vm357_vm3, %v304_v21, 0.0  ;;  %v369_v51 = vsel %vm357_vm3, %v557_v9, 0.0  ;;  %v386_v52 = vmul.f32 %v558_v17, %v558_v17 }
  0xee   : > { %v391_v40 = vadd.f32 %v390_v36, %v389_v35  ;;  %v364_v41 = vadd.f32 %v363_v37, %v362_v34  ;;  %v396_v53 = vsel %vm357_vm3, %v384_v44, 0.0  ;;  %v371_v57 = vsel %vm357_vm3, %v558_v17, 0.0 }
  0xef   : > { %v398_v56 = vsel %vm357_vm3, %v385_v47, 0.0  ;;  %v400_v60 = vsel %vm357_vm3, %v386_v52, 0.0 }
  0xf0   : > { %v366_v45 = vadd.f32 %v365_v38, %v364_v41  ;;  %v393_v46 = vadd.f32 %v392_v42, %v391_v40 }
  0xf2   : > { %v395_v49 = vadd.f32 %v394_v43, %v393_v46  ;;  %v368_v50 = vadd.f32 %v367_v48, %v366_v45 }
  0xf4   : > { %v370_v54 = vadd.f32 %v369_v51, %v368_v50  ;;  %v397_v55 = vadd.f32 %v396_v53, %v395_v49 }
  0xf6   : > { %v372_v58 = vadd.f32 %v371_v57, %v370_v54  ;;  %v399_v59 = vadd.f32 %v398_v56, %v397_v55 }
  0xf8   : > { %v373_v61 = vrot.slane %v372_v58, 4  ;;  %v401_v62 = vadd.f32 %v400_v60, %v399_v59 }
  0xfa   : > { %v374_v63 = vadd.f32 %v373_v61, %v372_v58  ;;  %v402_v0 = vrot.slane %v401_v62, 4 }
  0xfc   : > { %v375_v1 = vrot.slane %v374_v63, 2  ;;  %v403_v2 = vadd.f32 %v402_v0, %v401_v62 }
  0xfe   : > { %v376_v3 = vadd.f32 %v375_v1, %v374_v63  ;;  %v404_v4 = vrot.slane %v403_v2, 2 }
 0x100   : > { %v377_v5 = vrot.slane %v376_v3, 1  ;;  %v405_v6 = vadd.f32 %v404_v4, %v403_v2 }
 0x102   : > { %v406_v7 = vrot.slane %v405_v6, 1  ;;  %v378_v8 = vadd.f32 %v377_v5, %v376_v3 }
 0x104   : > { %v407_v9 = vadd.f32 %v406_v7, %v405_v6 }
 0x106   : > { %v409_v10 = vsel %vm408_vm4, %v378_v8, %v407_v9 }
 0x107   : > { %411 = vst.msk [vmem:[%s184_s4] sm:$0x3] %vm410_vm5, %v409_v10 }
 0x108 PF: > { %s14_s12 = sadd.s32 1, %s588_s12  }
 0x109   : > { %p11_p5 = scmp.ge.s32.totalorder %s14_s12, 4  }
 0x10b   :  { %13 = sbr.rel (!%p11_p5) target bundleno = 1 (0x1), region = 70 }

// kernel: basic_block_forward.4
= control target key start
LH: loop header
LB: loop body
LE: loop exit
PB: predicated region body
PF: predicated region fallthrough
CT: control target
= control target key end

     0   :  { %s1810_s17 = smov 0   ;;  %s1812_s18 = smov 0   ;;  %s2098_s0 = inlined_call_operand.vmem [shape: bf16[2,10,10,8], index: 0, kind: input, shape index: {}, may-alias: {0,1,2}]   ;;  %s2099_s1 = inlined_call_operand.vmem [shape: bf16[2,10,10,8], index: 1, kind: input, shape index: {}, may-alias: {0,1,2}]   ;;  %s2100_s2 = inlined_call_operand.vmem [shape: bf16[2,10,10,8], index: 2, kind: input, shape index: {}, may-alias: {0,1,2}]   ;;  %s2101_s3 = inlined_call_operand.vmem [shape: bf16[9,8,128], index: 3, kind: input, shape index: {}]   ;;  %s2102_s4 = inlined_call_operand.vmem [shape: f32[1,8], index: 4, kind: input, shape index: {}]   ;;  %s2103_s5 = inlined_call_operand.vmem [shape: f32[1,8], index: 5, kind: input, shape index: {}]   ;;  %s2104_s6 = inlined_call_operand.vmem [shape: bf16[2,8,8,4], index: 6, kind: input, shape index: {}]   ;;  %s2105_s7 = inlined_call_operand.vmem [shape: bf16[4,128], index: 7, kind: input, shape index: {}]   ;;  %s2106_s8 = inlined_call_operand.vmem [shape: bf16[2,8,8,8], index: 8, kind: output, shape index: {0}]   ;;  %s2107_s9 = inlined_call_operand.vmem [shape: f32[2,2,8], index: 9, kind: output, shape index: {1}]   ;;  %s2108_s10 = inlined_call_operand.vmem [shape: bf16[2,8,8,8], index: 10, kind: output, shape index: {2}]   ;;  %s2109_s11 = inlined_call_operand.vmem [shape: f32[2,2,8], index: 11, kind: output, shape index: {3}]  }
   0x1   :  { %s1814_s19 = smov 0   ;;  %s1816_s20 = smov 0  }
   0x2   :  { %s1818_s21 = smov 0  }
   0x3 LB: > { %2112 = sst [smem:[#allocation2_spill]] %s1736_s19  ;;  %s31_s22 = sadd.s32 1, %s1736_s19  ;;  %s1744_s21 = sphi %s1818_s21, %s22_s21   ;;  %s1740_s20 = sphi %s1816_s20, %s2121_s20   ;;  %s1736_s19 = sphi %s1814_s19, %s2120_s19   ;;  %s1732_s18 = sphi %s1812_s18, %s2119_s18   ;;  %s1728_s17 = sphi %s1810_s17, %s2118_s17  }
   0x4   : > { %2113 = sst [smem:[#allocation3_spill]] %s1740_s20  ;;  %s34_s23 = sadd.s32 1, %s1740_s20 }
   0x5   : > { %p32_p0 = scmp.ge.s32.totalorder %s31_s22, 8  ;;  %p1510_p1 = scmp.ge.s32.totalorder %s1744_s21, 1 }
   0x6   : > { %p421_p2 = scmp.lt.s32.totalorder %s1744_s21, 17 }
   0x7   : > { %s2123_s22 = smov (%p32_p0, %s31_s22), 0  ;;  %s2125_s23 = smov (!%p32_p0, %s34_s23), %s1740_s20 }
   0x8   : > { %2114 = sst [smem:[#allocation4_spill]] %s2123_s22  ;;  %p422_p3 = pnand %p1510_p1, %p421_p2 }
   0x9   : > { %p36_p4 = scmp.ge.s32.totalorder %s2125_s23, 2  ;;  %vm639_vm0 = vcmask (!%p422_p3), 1043456   ;;  %v1536_v0 = vld [vmem:[%s2101_s3 + $0x10] sm:$0xf] (!%p422_p3)  ;;  %v1528_v1 = vld [vmem:[%s2101_s3 + $0x4] sm:$0xf] (!%p422_p3)  ;;  %v578_v5 = vlaneseq (!%p422_p3) }
   0xa   : > { %425 = sbr.rel (%p422_p3) target bundleno = 566 (0x236), region = 52  ;;  %v1746_v2 = vmov (!%p422_p3), 0.0   ;;  %v867_v3 = vsel (!%p422_p3), %vm639_vm0, %v1536_v0, 0  ;;  %v641_v4 = vsel (!%p422_p3), %vm639_vm0, %v1528_v1, 0  ;;  %p512_p5 = scmp.lt.s32.totalorder (!%p422_p3), %s1732_s18, 1  ;;  %vm1747_vm1 = vmmov (!%p422_p3), 0  }
   0xb   : > { %s2127_s23 = smov (%p36_p4, %s2125_s23), 0  ;;  %1596 = vmatprep.subr.bf16.mxu0 (!%p422_p3), %v1746_v2  ;;  %1572 = vmatprep.subr.bf16.mxu1 (!%p422_p3), %v1746_v2  ;;  %p514_p6 = scmp.lt.s32.totalorder (!%p422_p3), %s1728_s17, 9  ;;  %v1873_v6 = vshrl.u32 (!%p422_p3), %v578_v5, 7  ;;  %v1896_v7 = vld [vmem:[%s2102_s4] ss:$0 sm:$0xff] (!%p422_p3)  ;;  %vm635_vm8 = vcmask (!%p422_p3), 64512  }
   0xc   : > { %2115 = sst [smem:[#allocation5_spill]] %s2127_s23  ;;  %1597 = vmatpush3.bf16.msra.mxu0 (!%p422_p3), %v867_v3  ;;  %1573 = vmatpush3.bf16.msra.mxu1 (!%p422_p3), %v641_v4  ;;  %p589_p7 = scmp.ge.s32.totalorder (!%p422_p3), %s1728_s17, 1  ;;  %v1905_v13 = vld [vmem:[%s2103_s5] ss:$0 sm:$0xff] (!%p422_p3)  ;;  %v1538_v46 = vld [vmem:[%s2101_s3 + $0x14] sm:$0xf] (!%p422_p3) }
   0xd   : > { %1574 = vmatprep.mubr.msk.bf16.mxu1 (!%p422_p3), %vm1747_vm1, %v1746_v2  ;;  %1598 = vmatprep.mubr.msk.bf16.mxu0 (!%p422_p3), %vm1747_vm1, %v1746_v2  ;;  %v1899_v8 = vadd.s32 (!%p422_p3), 8, %v1873_v6  ;;  %vm581_vm2 = vcmp.ge.s32.totalorder (!%p422_p3), %v1873_v6, 1  ;;  %v625_v33 = vld [vmem:[%s2101_s3] sm:$0xf] (!%p422_p3)  ;;  %v918_v48 = vsel (!%p422_p3), %vm639_vm0, %v1538_v46, 0  ;;  %p545_p1 = scmp.lt.s32.totalorder (!%p422_p3), %s1728_s17, 7 }
   0xe   : > { %1602 = vmatprep.subr.bf16.mxu0 (!%p422_p3), %v1746_v2  ;;  %1578 = vmatprep.subr.bf16.mxu1 (!%p422_p3), %v1746_v2  ;;  %p591_p8 = pnand (!%p422_p3), %p589_p7, %p514_p6  ;;  %v686_v40 = vsel (!%p422_p3), %vm639_vm0, %v625_v33, 0  ;;  %v1531_v50 = vld [vmem:[%s2101_s3 + $0x8] sm:$0xf] (!%p422_p3)  ;;  %v1541_v58 = vld [vmem:[%s2101_s3 + $0x18] sm:$0xf] (!%p422_p3)  ;;  %vm1144_vm14 = vcmask (!%p422_p3), 60416  }
   0xf   : > { %vm584_vm3 = vcmp.lt.s32.totalorder (!%p422_p3), %v1899_v8, 9  ;;  %v736_v53 = vsel (!%p422_p3), %vm639_vm0, %v1531_v50, 0  ;;  %v994_v63 = vsel (!%p422_p3), %vm639_vm0, %v1541_v58, 0  ;;  %v1534_v0 = vld [vmem:[%s2101_s3 + $0xc] sm:$0xf] (!%p422_p3)  ;;  %vm1161_vm15 = vcmask (!%p422_p3), 1040384  }
  0x10   : > { %v812_v5 = vsel (!%p422_p3), %vm639_vm0, %v1534_v0, 0  ;;  %v1543_v6 = vld [vmem:[%s2101_s3 + $0x1c] sm:$0xf] (!%p422_p3)  ;;  %p1547_p2 = scmp.ne.s32.totalorder (!%p422_p3), %s1728_s17, 0 }
  0x11   : > { %s2129_s18 = smov (!%p512_p5, %s1732_s18), 1 }
  0x12   : > { %s515_s28 = scalar_select %p514_p6, %s1728_s17, 9 }
  0x13   : > { %s1870_s29 = smul.u32 20, %s2129_s18  ;;  %s1521_s30 = sshll.u32 %s2129_s18, 1 }
  0x14   : > { %s1511_s12 = sshll.u32 %s515_s28, 1  ;;  %s1878_s15 = scalar_lea.vmem %s2107_s9, %s1521_s30 }
  0x15   : > { %s518_s16 = sadd.s32 %s1870_s29, %s1511_s12  ;;  %s1884_s26 = scalar_lea.vmem %s2109_s11, %s1521_s30 }
  0x16   : > { %s1512_s27 = sshll.u32 %s518_s16, 2  ;;  %s521_s12 = sadd.s32 1, %s1728_s17 }
  0x17   : > { %s520_s20 = scalar_lea.vmem %s2098_s0, %s1512_s27  ;;  %p524_p9 = scmp.lt.s32.totalorder %s521_s12, 9 }
  0x18   : > { %v587_v9 = vld [vmem:[%s520_s20] sm:$0xf]  ;;  %v588_v10 = vld [vmem:[%s520_s20 + $0x4] sm:$0x1]  ;;  %s1527_s30 = scalar_select %p591_p8, 0, 1 }
  0x19   : > { %v593_v11 = vunpack.c.l.bf16 %v587_v9  ;;  %v594_v12 = vunpack.c.l.bf16 %v588_v10  ;;  %p782_p10 = scmp.ge.s32.totalorder %s521_s12, 1  ;;  %s1913_s20 = sadd.s32 2, %s1728_s17 }
  0x1a   : > { %v614_v14 = vstv %s1527_s30  ;;  %s525_s19 = scalar_select %p524_p9, %s521_s12, 9 }
  0x1b   : > { %v601_v15 = vmul.f32 %v1896_v7, %v593_v11  ;;  %v602_v16 = vmul.f32 %v1896_v7, %v594_v12  ;;  %vm615_vm4 = vcmp.eq.s32.totalorder %v614_v14, 1  ;;  %p1924_p11 = pnand %p782_p10, %p524_p9  ;;  %p535_p12 = scmp.lt.s32.totalorder %s1913_s20, 9  ;;  %v1049_v11 = vsel %vm639_vm0, %v1543_v6, 0  ;;  %v1545_v14 = vld [vmem:[%s2101_s3 + $0x20] sm:$0xf] }
  0x1c   : > { %vm616_vm5 = vmand %vm615_vm4, %vm581_vm2  ;;  %s1513_s22 = sshll.u32 %s525_s19, 1  ;;  %p964_p13 = scmp.ge.s32.totalorder %s1913_s20, 1 }
  0x1d   : > { %v609_v17 = vadd.f32 %v1905_v13, %v601_v15  ;;  %v610_v18 = vadd.f32 %v1905_v13, %v602_v16  ;;  %vm617_vm6 = vmand %vm615_vm4, %vm584_vm3  ;;  %s528_s23 = sadd.s32 %s1870_s29, %s1513_s22  ;;  %v1100_v16 = vsel %vm639_vm0, %v1545_v14, 0  ;;  %s1517_s25 = sshll.u32 %s2129_s18, 3  ;;  %vm1167_vm0 = vcmask (!%p1547_p2), 58368  }
  0x1e   : > { %s1514_s24 = sshll.u32 %s528_s23, 2  ;;  %p1971_p0 = pnand %p964_p13, %p535_p12 }
  0x1f   : > { %v611_v19 = vmax.f32 %v609_v17, 0.0  ;;  %v612_v20 = vmax.f32 %v610_v18, 0.0  ;;  %s530_s28 = scalar_lea.vmem %s2099_s1, %s1514_s24 }
  0x20   : > { %v779_v23 = vld [vmem:[%s530_s28] sm:$0xf]  ;;  %v780_v24 = vld [vmem:[%s530_s28 + $0x4] sm:$0x1]  ;;  %s1533_s12 = scalar_select %p1924_p11, 0, 1 }
  0x21   : > { %v622_v21 = vsel %vm616_vm5, %v611_v19, 0.0  ;;  %v623_v22 = vsel %vm617_vm6, %v612_v20, 0.0  ;;  %v786_v26 = vunpack.c.l.bf16 %v779_v23  ;;  %v787_v27 = vunpack.c.l.bf16 %v780_v24  ;;  %s536_s30 = scalar_select %p535_p12, %s1913_s20, 9 }
  0x22   : > { %v1932_v25 = vpack.c.bf16 %v623_v22, %v622_v21  ;;  %v795_v32 = vstv %s1533_s12  ;;  %s1540_s20 = scalar_select %p1971_p0, 0, 1 }
  0x23   : > { %v788_v30 = vmul.f32 %v1896_v7, %v786_v26  ;;  %v789_v31 = vmul.f32 %v1896_v7, %v787_v27  ;;  %s1515_s19 = sshll.u32 %s536_s30, 1  ;;  %vm796_vm7 = vcmp.eq.s32.totalorder %v795_v32, 1 }
  0x24   : > { %v629_v28 = vshrl.u32 %v1932_v25, 16  ;;  %v631_v29 = vshll.u32 %v1932_v25, 16  ;;  %vm797_vm9 = vmand %vm796_vm7, %vm581_vm2  ;;  %s539_s22 = sadd.s32 %s1870_s29, %s1515_s19  ;;  %v977_v59 = vstv %s1540_s20  ;;  %v731_v1 = vrot.slane %v1932_v25, 1 }
  0x25   : > { %v790_v35 = vadd.f32 %v1905_v13, %v788_v30  ;;  %v791_v36 = vadd.f32 %v1905_v13, %v789_v31  ;;  %vm798_vm10 = vmand %vm796_vm7, %vm584_vm3  ;;  %s1516_s23 = sshll.u32 %s539_s22, 2  ;;  %vm978_vm11 = vcmp.eq.s32.totalorder %v977_v59, 1 }
  0x26   : > { %v633_v34 = vrot.slane %v631_v29, 1  ;;  %s541_s27 = scalar_lea.vmem %s2100_s2, %s1516_s23  ;;  %vm979_vm12 = vmand %vm978_vm11, %vm581_vm2 }
  0x27   : > { %v792_v38 = vmax.f32 %v790_v35, 0.0  ;;  %v793_v39 = vmax.f32 %v791_v36, 0.0  ;;  %v961_v51 = vld [vmem:[%s541_s27] sm:$0xf]  ;;  %v962_v52 = vld [vmem:[%s541_s27 + $0x4] sm:$0x1]  ;;  %vm980_vm13 = vmand %vm978_vm11, %vm584_vm3 }
  0x28   : > { %v634_v37 = vor.u32 %v633_v34, %v629_v28  ;;  %v968_v54 = vunpack.c.l.bf16 %v961_v51  ;;  %v969_v55 = vunpack.c.l.bf16 %v962_v52  ;;  %s546_s27 = scalar_select %p545_p1, %s1728_s17, 7 }
  0x29   : > { %v803_v41 = vsel %vm797_vm9, %v792_v38, 0.0  ;;  %v804_v42 = vsel %vm798_vm10, %v793_v39, 0.0 }
  0x2a   : > { %1575 = vmatmul.mubr.msk.bf16.vlgmr.msra.gmra.mrb[0].mxu1 %vm635_vm8, %v634_v37  ;;  %v805_v43 = vpack.c.bf16 %v804_v42, %v803_v41  ;;  %v970_v56 = vmul.f32 %v1896_v7, %v968_v54  ;;  %v971_v57 = vmul.f32 %v1896_v7, %v969_v55  ;;  %s548_s28 = sadd.s32 %s1517_s25, %s546_s27 }
  0x2b   : > { %1579 = vmatpush3.bf16.msra.mxu1 %v686_v40  ;;  %1580 = vmatprep.mubr.msk.bf16.mxu1 %vm1747_vm1, %v1746_v2  ;;  %s2031_s12 = sshll.u32 %s548_s28, 2 }
  0x2c   : > { %1584 = vmatprep.subr.bf16.mxu1 %v1746_v2  ;;  %v857_v44 = vshrl.u32 %v805_v43, 16  ;;  %v859_v45 = vshll.u32 %v805_v43, 16  ;;  %v913_v60 = vrot.slane %v805_v43, 1  ;;  %v972_v61 = vadd.f32 %v1905_v13, %v970_v56  ;;  %s550_s13 = scalar_lea.vmem %s2104_s6, %s2031_s12  ;;  %s570_s22 = scalar_lea.vmem %s2108_s10, %s2031_s12 }
  0x2d   : > { %v973_v62 = vadd.f32 %v1905_v13, %v971_v57  ;;  %s558_s16 = scalar_lea.vmem %s2106_s8, %s2031_s12 }
  0x2e   : > { %v861_v47 = vrot.slane %v859_v45, 1  ;;  %v974_v3 = vmax.f32 %v972_v61, 0.0 }
  0x2f   : > { %v975_v4 = vmax.f32 %v973_v62, 0.0 }
  0x30   : > { %v862_v49 = vor.u32 %v861_v47, %v857_v44  ;;  %v985_v7 = vsel %vm979_vm12, %v974_v3, 0.0  ;;  %v1748_v44 = vmov (!%p1547_p2), 0.0  }
  0x31   : > { %v986_v9 = vsel %vm980_vm13, %v975_v4, 0.0  ;;  %1168 = vst.msk [vmem:[%s1878_s15] sm:$0x3] (!%p1547_p2), %vm1167_vm0, %v1748_v44 }
  0x32   : > { %1599 = vmatmul.mubr.msk.bf16.vlgmr.msra.gmra.mrb[0].mxu0 %vm635_vm8, %v862_v49  ;;  %v987_v10 = vpack.c.bf16 %v986_v9, %v985_v7 }
  0x33   : > { %1603 = vmatpush3.bf16.msra.mxu0 %v918_v48  ;;  %1604 = vmatprep.mubr.msk.bf16.mxu0 %vm1747_vm1, %v1746_v2 }
  0x34   : > { %1608 = vmatprep.subr.bf16.mxu0 %v1746_v2  ;;  %v1041_v8 = vshll.u32 %v987_v10, 16  ;;  %v1039_v12 = vshrl.u32 %v987_v10, 16  ;;  %v1095_v17 = vrot.slane %v987_v10, 1 }
  0x36   : > { %1581 = vmatmul.mubr.msk.bf16.vlgmr.msra.gmra.mrb[0].mxu1 %vm635_vm8, %v1932_v25  ;;  %v1043_v13 = vrot.slane %v1041_v8, 1 }
  0x37   : > { %1585 = vmatpush3.bf16.msra.mxu1 %v736_v53  ;;  %1586 = vmatprep.mubr.msk.bf16.mxu1 %vm1747_vm1, %v1746_v2 }
  0x38   : > { %1590 = vmatprep.subr.bf16.mxu1 %v1746_v2  ;;  %v1044_v15 = vor.u32 %v1043_v13, %v1039_v12 }
  0x3e   : > { %1605 = vmatmul.mubr.msk.bf16.vlgmr.msra.gmra.mrb[0].mxu0 %vm635_vm8, %v913_v60 }
  0x3f   : > { %1609 = vmatpush3.bf16.msra.mxu0 %v994_v63  ;;  %1610 = vmatprep.mubr.msk.bf16.mxu0 %vm1747_vm1, %v1746_v2 }
  0x40   : > { %1614 = vmatprep.subr.bf16.mxu0 %v1746_v2 }
  0x42   : > { %1587 = vmatmul.mubr.msk.bf16.vlgmr.msra.gmra.mrb[0].mxu1 %vm635_vm8, %v731_v1 }
  0x43   : > { %1591 = vmatpush3.bf16.msra.mxu1 %v812_v5  ;;  %1592 = vmatprep.mubr.msk.bf16.mxu1 %vm1747_vm1, %v1746_v2 }
  0x4a   : > { %1611 = vmatmul.mubr.msk.bf16.vlgmr.msra.gmra.mrb[0].mxu0 %vm635_vm8, %v987_v10 }
  0x4b   : > { %1615 = vmatpush3.bf16.msra.mxu0 %v1049_v11  ;;  %1616 = vmatprep.mubr.msk.bf16.mxu0 %vm1747_vm1, %v1746_v2 }
  0x4c   : > { %1620 = vmatprep.subr.bf16.mxu0 %v1746_v2 }
  0x4e   : > { %1593 = vmatmul.mubr.msk.bf16.vlgmr.msra.gmra.mrb[0].mxu1 %vm635_vm8, %v805_v43 }
  0x56   : > { %1617 = vmatmul.mubr.msk.bf16.vlgmr.msra.gmra.mrb[0].mxu0 %vm635_vm8, %v1044_v15 }
  0x57   : > { %1621 = vmatpush3.bf16.msra.mxu0 %v1100_v16  ;;  %1622 = vmatprep.mubr.msk.bf16.mxu0 %vm1747_vm1, %v1746_v2 }
  0x62   : > { %1623 = vmatmul.mubr.msk.bf16.vlgmr.msra.gmra.mrb[0].mxu0 %vm635_vm8, %v1095_v17 }
 0x121   : > { %v848_v18 = vpop.f32.mrb[0].mxu1 }
 0x122   : > { %v1594_v19 = vpop.f32.mrb[1].mxu1 }
 0x123   : > { %v851_v20 = vpop.f32.mrb[2].mxu1 }
 0x124   : > { %v1595_v21 = vpop.f32.mrb[3].mxu1 }
 0x135   : > { %v1136_v22 = vpop.f32.mrb[0].mxu0 }
 0x136   : > { %v1632_v23 = vadd.f32 %v1136_v22, %v848_v18  ;;  %v1624_v24 = vpop.f32.mrb[1].mxu0 }
 0x137   : > { %v1139_v25 = vpop.f32.mrb[2].mxu0 }
 0x138   : > { %v1143_v26 = vpack.c.bf16 %v1632_v23, %v1632_v23  ;;  %v1146_v27 = vsel %vm635_vm8, %v1632_v23, 0.0  ;;  %v1153_v28 = vmul.f32 %v1632_v23, %v1632_v23  ;;  %v1625_v29 = vpop.f32.mrb[3].mxu0 }
 0x139   : > { %v1147_v30 = vrot.slane %v1146_v27, 4 }
 0x13a   : > { %1145 = vst.msk [vmem:[%s558_s16] sm:$0xf] %vm1144_vm14, %v1143_v26  ;;  %v1154_v31 = vsel %vm635_vm8, %v1153_v28, 0.0 }
 0x13b   : > { %v1148_v32 = vadd.f32 %v1147_v30, %v1146_v27  ;;  %v1155_v33 = vrot.slane %v1154_v31, 4 }
 0x13d   : > { %v1149_v34 = vrot.slane %v1148_v32, 2  ;;  %v1156_v35 = vadd.f32 %v1155_v33, %v1154_v31 }
 0x13f   : > { %v1150_v36 = vadd.f32 %v1149_v34, %v1148_v32  ;;  %v1157_v37 = vrot.slane %v1156_v35, 2 }
 0x141   : > { %v1151_v38 = vrot.slane %v1150_v36, 1  ;;  %v1158_v39 = vadd.f32 %v1157_v37, %v1156_v35  ;;  %1166 = sbr.rel (%p1547_p2) target bundleno = 328 (0x148), region = 56 }
 0x143   : > { %v1159_v40 = vrot.slane %v1158_v39, 1  ;;  %v1152_v41 = vadd.f32 %v1151_v38, %v1150_v36 }
 0x145   : > { %v1160_v42 = vadd.f32 %v1159_v40, %v1158_v39 }
 0x147   : > { %v1162_v43 = vsel %vm1161_vm15, %v1152_v41, %v1160_v42 }
 0x148 PF: > { %v1169_v45 = vld [vmem:[%s1878_s15] sm:$0x3]  ;;  %vm1171_vm2 = vcmask 58368   ;;  %1626 = vmatprep.subr.bf16.mxu1 %v1746_v2  ;;  %vm1179_vm3 = vcmask 1041408   ;;  %1628 = vmatprep.mubr.msk.bf16.mxu1 %vm1747_vm1, %v1746_v2  ;;  %vm1175_vm4 = vcmask 31744   ;;  %v1749_v9 = vmov (!%p1547_p2), 0.0  }
 0x149   : > { %v1174_v46 = vld [vmem:[%s2105_s7] sm:$0x3]  ;;  %v1170_v47 = vadd.f32 %v1169_v45, %v1162_v43  ;;  %1244 = vst.msk [vmem:[%s1884_s26] sm:$0x3] (!%p1547_p2), %vm1171_vm2, %v1749_v9 }
 0x14a   : > { %v1181_v48 = vsel %vm1179_vm3, %v1174_v46, 0  ;;  %v1173_v49 = vld [vmem:[%s550_s13] sm:$0xf] }
 0x14b   : > { %1627 = vmatpush3.bf16.msra.mxu1 %v1181_v48  ;;  %1172 = vst.msk [vmem:[%s1878_s15] sm:$0x3] %vm1171_vm2, %v1170_v47 }
 0x14e   : > { %1629 = vmatmul.mubr.msk.bf16.vlgmr.msra.gmra.mrb[4].mxu1 %vm1175_vm4, %v1173_v49 }
 0x221   : > { %v1217_v50 = vpop.f32.mrb[4].mxu1 }
 0x222   : > { %v1223_v51 = vpack.c.bf16 %v1217_v50, %v1217_v50  ;;  %v1225_v52 = vsel %vm635_vm8, %v1217_v50, 0.0  ;;  %v1232_v53 = vmul.f32 %v1217_v50, %v1217_v50  ;;  %v1630_v54 = vpop.f32.mrb[5].mxu1 }
 0x223   : > { %v1226_v55 = vrot.slane %v1225_v52, 4  ;;  %v1220_v2 = vpop.f32.mrb[6].mxu1 }
 0x224   : > { %1224 = vst.msk [vmem:[%s570_s22] sm:$0xf] %vm1144_vm14, %v1223_v51  ;;  %v1233_v56 = vsel %vm635_vm8, %v1232_v53, 0.0  ;;  %v1631_v57 = vpop.f32.mrb[7].mxu1 }
 0x225   : > { %v1227_v58 = vadd.f32 %v1226_v55, %v1225_v52  ;;  %v1234_v59 = vrot.slane %v1233_v56, 4 }
 0x227   : > { %v1228_v60 = vrot.slane %v1227_v58, 2  ;;  %v1235_v61 = vadd.f32 %v1234_v59, %v1233_v56 }
 0x229   : > { %v1229_v62 = vadd.f32 %v1228_v60, %v1227_v58  ;;  %v1236_v63 = vrot.slane %v1235_v61, 2 }
 0x22b   : > { %v1230_v0 = vrot.slane %v1229_v62, 1  ;;  %v1237_v1 = vadd.f32 %v1236_v63, %v1235_v61  ;;  %1243 = sbr.rel (%p1547_p2) target bundleno = 562 (0x232), region = 60 }
 0x22d   : > { %v1238_v3 = vrot.slane %v1237_v1, 1  ;;  %v1231_v4 = vadd.f32 %v1230_v0, %v1229_v62 }
 0x22f   : > { %v1239_v5 = vadd.f32 %v1238_v3, %v1237_v1 }
 0x231   : > { %v1240_v7 = vsel %vm1161_vm15, %v1231_v4, %v1239_v5 }
 0x232 PF: > { %v1245_v6 = vld [vmem:[%s1884_s26] sm:$0x3] }
 0x233   : > { %v1246_v10 = vadd.f32 %v1245_v6, %v1240_v7 }
 0x235   : > { %1247 = vst.msk [vmem:[%s1884_s26] sm:$0x3] %vm1171_vm2, %v1246_v10 }
 0x236 PF: > { %s22_s21 = sadd.s32 1, %s1744_s21   ;;  %s2118_s17 = sld [smem:[#allocation2_spill]] }
 0x237   : > { %p19_p3 = scmp.ge.s32.totalorder %s22_s21, 18   ;;  %s2119_s18 = sld [smem:[#allocation3_spill]] }
 0x238   : > { %s2120_s19 = sld [smem:[#allocation4_spill]]  ;;  %s2121_s20 = sld [smem:[#allocation5_spill]] }
 0x239   :  { %21 = sbr.rel (!%p19_p3) target bundleno = 3 (0x3), region = 143 }

// kernel: basic_block_forward.5
= control target key start
LH: loop header
LB: loop body
LE: loop exit
PB: predicated region body
PF: predicated region fallthrough
CT: control target
= control target key end

     0   :  { %s568_s21 = smov 0   ;;  %s664_s0 = inlined_call_operand.vmem [shape: bf16[128,8], index: 0, kind: input, shape index: {}]   ;;  %s665_s1 = inlined_call_operand.vmem [shape: f32[1,8], index: 1, kind: input, shape index: {}]   ;;  %s666_s2 = inlined_call_operand.vmem [shape: f32[1,8], index: 2, kind: input, shape index: {}]   ;;  %s667_s3 = inlined_call_operand.vmem [shape: bf16[128,8], index: 3, kind: input, shape index: {}]   ;;  %s668_s4 = inlined_call_operand.vmem [shape: f32[1,8], index: 4, kind: input, shape index: {}]   ;;  %s669_s5 = inlined_call_operand.vmem [shape: f32[1,8], index: 5, kind: input, shape index: {}]   ;;  %s670_s6 = inlined_call_operand.vmem [shape: f32[128,8], index: 6, kind: output, shape index: {}]  }
   0x1 LB: > { %s462_s22 = sadd.s32 4294967295, %s531_s21   ;;  %p466_p0 = scmp.ge.s32.totalorder %s531_s21, 1  ;;  %s531_s21 = sphi %s568_s21, %s16_s21  }
   0x2   : > { %p224_p1 = scmp.lt.s32.totalorder %s531_s21, 3 }
   0x4   : > { %p225_p2 = pnand %p466_p0, %p224_p1 }
   0x5   : > { %s467_s23 = sshll.u32 (!%p225_p2), %s462_s22, 3  ;;  %v592_v0 = vld [vmem:[%s665_s1] ss:$0 sm:$0xff] (!%p225_p2)  ;;  %vm385_vm0 = vcmask (!%p225_p2), 64512  }
   0x6   : > { %228 = sbr.rel (%p225_p2) target bundleno = 42 (0x2a), region = 44  ;;  %p260_p3 = scmp.lt.s32.totalorder (!%p225_p2), %s467_s23, 15  ;;  %v597_v1 = vld [vmem:[%s668_s4] ss:$0 sm:$0xff] (!%p225_p2) }
   0x7   : > { %v606_v10 = vld [vmem:[%s666_s2] ss:$0 sm:$0xff] (!%p225_p2) }
   0x8   : > { %v476_v29 = vld [vmem:[%s669_s5] ss:$0 sm:$0xff] (!%p225_p2) }
   0xd   : > { %s672_s23 = smov (!%p260_p3, %s467_s23), 15 }
   0xe   : > { %s468_s24 = sshll.u32 %s672_s23, 2  ;;  %s472_s15 = sshll.u32 %s672_s23, 3 }
   0xf   : > { %s582_s27 = scalar_lea.vmem %s664_s0, %s468_s24  ;;  %s587_s30 = scalar_lea.vmem %s667_s3, %s468_s24 }
  0x10   : > { %v480_v2 = vld [vmem:[%s582_s27] sm:$0xff]   ;;  %v511_v4 = vld [vmem:[%s582_s27 + $0x8] sm:$0xff]   ;;  %v512_v15 = vld [vmem:[%s582_s27 + $0x10] sm:$0xff]   ;;  %s636_s18 = scalar_lea.vmem %s670_s6, %s472_s15 }
  0x11   : > { %v496_v3 = vld [vmem:[%s587_s30] sm:$0xff]   ;;  %v481_v5 = vunpack.c.l.bf16 %v480_v2  ;;  %v482_v7 = vunpack.c.h.bf16 %v480_v2  ;;  %v514_v9 = vld [vmem:[%s587_s30 + $0x8] sm:$0xff]   ;;  %v485_v11 = vunpack.c.l.bf16 %v511_v4  ;;  %v486_v13 = vunpack.c.h.bf16 %v511_v4  ;;  %v515_v16 = vld [vmem:[%s587_s30 + $0x10] sm:$0xff]  }
  0x12   : > { %v497_v6 = vunpack.c.l.bf16 %v496_v3  ;;  %v498_v8 = vunpack.c.h.bf16 %v496_v3  ;;  %v501_v12 = vunpack.c.l.bf16 %v514_v9  ;;  %v502_v14 = vunpack.c.h.bf16 %v514_v9  ;;  %v513_v34 = vld [vmem:[%s582_s27 + $0x18] sm:$0xff]  }
  0x13   : > { %v300_v17 = vmul.f32 %v481_v5, %v592_v0  ;;  %v301_v19 = vmul.f32 %v482_v7, %v592_v0  ;;  %v302_v21 = vmul.f32 %v485_v11, %v592_v0  ;;  %v303_v23 = vmul.f32 %v486_v13, %v592_v0  ;;  %v516_v39 = vld [vmem:[%s587_s30 + $0x18] sm:$0xff]  }
  0x14   : > { %v346_v18 = vmul.f32 %v497_v6, %v597_v1  ;;  %v347_v20 = vmul.f32 %v498_v8, %v597_v1  ;;  %v348_v22 = vmul.f32 %v501_v12, %v597_v1  ;;  %v349_v24 = vmul.f32 %v502_v14, %v597_v1 }
  0x15   : > { %v315_v25 = vadd.f32 %v606_v10, %v300_v17  ;;  %v316_v26 = vadd.f32 %v606_v10, %v301_v19  ;;  %v489_v27 = vunpack.c.l.bf16 %v512_v15  ;;  %v505_v28 = vunpack.c.l.bf16 %v515_v16 }
  0x16   : > { %v317_v30 = vadd.f32 %v606_v10, %v302_v21  ;;  %v318_v31 = vadd.f32 %v606_v10, %v303_v23  ;;  %v490_v32 = vunpack.c.h.bf16 %v512_v15  ;;  %v506_v33 = vunpack.c.h.bf16 %v515_v16 }
  0x17   : > { %v354_v35 = vadd.f32 %v346_v18, %v315_v25  ;;  %v355_v36 = vadd.f32 %v347_v20, %v316_v26  ;;  %v304_v37 = vmul.f32 %v489_v27, %v592_v0  ;;  %v350_v38 = vmul.f32 %v505_v28, %v597_v1 }
  0x18   : > { %v356_v40 = vadd.f32 %v348_v22, %v317_v30  ;;  %v357_v41 = vadd.f32 %v349_v24, %v318_v31  ;;  %v305_v42 = vmul.f32 %v490_v32, %v592_v0  ;;  %v351_v43 = vmul.f32 %v506_v33, %v597_v1 }
  0x19   : > { %v369_v44 = vadd.f32 %v476_v29, %v354_v35  ;;  %v370_v45 = vadd.f32 %v476_v29, %v355_v36  ;;  %v319_v46 = vadd.f32 %v606_v10, %v304_v37  ;;  %v493_v47 = vunpack.c.l.bf16 %v513_v34 }
  0x1a   : > { %v371_v48 = vadd.f32 %v476_v29, %v356_v40  ;;  %v372_v49 = vadd.f32 %v476_v29, %v357_v41  ;;  %v320_v50 = vadd.f32 %v606_v10, %v305_v42  ;;  %v509_v51 = vunpack.c.l.bf16 %v516_v39 }
  0x1b   : > { %v377_v52 = vmax.f32 %v369_v44, 0.0  ;;  %v378_v53 = vmax.f32 %v370_v45, 0.0  ;;  %v358_v54 = vadd.f32 %v350_v38, %v319_v46  ;;  %v306_v55 = vmul.f32 %v493_v47, %v592_v0 }
  0x1c   : > { %v379_v56 = vmax.f32 %v371_v48, 0.0  ;;  %v380_v57 = vmax.f32 %v372_v49, 0.0  ;;  %v359_v58 = vadd.f32 %v351_v43, %v320_v50  ;;  %v352_v59 = vmul.f32 %v509_v51, %v597_v1 }
  0x1d   : > { %386 = vst.msk [vmem:[%s636_s18] sm:$0xff] %vm385_vm0, %v377_v52  ;;  %387 = vst.msk [vmem:[%s636_s18 + $0x8] sm:$0xff] %vm385_vm0, %v378_v53  ;;  %v373_v60 = vadd.f32 %v476_v29, %v358_v54  ;;  %v321_v61 = vadd.f32 %v606_v10, %v306_v55  ;;  %v494_v62 = vunpack.c.h.bf16 %v513_v34  ;;  %v510_v63 = vunpack.c.h.bf16 %v516_v39 }
  0x1e   : > { %388 = vst.msk [vmem:[%s636_s18 + $0x10] sm:$0xff] %vm385_vm0, %v379_v56  ;;  %389 = vst.msk [vmem:[%s636_s18 + $0x18] sm:$0xff] %vm385_vm0, %v380_v57  ;;  %v374_v2 = vadd.f32 %v476_v29, %v359_v58 }
  0x1f   : > { %v381_v3 = vmax.f32 %v373_v60, 0.0  ;;  %v360_v4 = vadd.f32 %v352_v59, %v321_v61  ;;  %v307_v5 = vmul.f32 %v494_v62, %v592_v0  ;;  %v353_v6 = vmul.f32 %v510_v63, %v597_v1 }
  0x20   : > { %v382_v7 = vmax.f32 %v374_v2, 0.0 }
  0x21   : > { %390 = vst.msk [vmem:[%s636_s18 + $0x20] sm:$0xff] %vm385_vm0, %v381_v3  ;;  %v375_v8 = vadd.f32 %v476_v29, %v360_v4  ;;  %v322_v9 = vadd.f32 %v606_v10, %v307_v5 }
  0x22   : > { %391 = vst.msk [vmem:[%s636_s18 + $0x28] sm:$0xff] %vm385_vm0, %v382_v7 }
  0x23   : > { %v383_v11 = vmax.f32 %v375_v8, 0.0  ;;  %v361_v12 = vadd.f32 %v353_v6, %v322_v9 }
  0x25   : > { %392 = vst.msk [vmem:[%s636_s18 + $0x30] sm:$0xff] %vm385_vm0, %v383_v11  ;;  %v376_v13 = vadd.f32 %v476_v29, %v361_v12 }
  0x27   : > { %v384_v14 = vmax.f32 %v376_v13, 0.0 }
  0x29   : > { %393 = vst.msk [vmem:[%s636_s18 + $0x38] sm:$0xff] %vm385_vm0, %v384_v14 }
  0x2a PF: > { %s16_s21 = sadd.s32 1, %s531_s21  }
  0x2b   : > { %p13_p4 = scmp.ge.s32.totalorder %s16_s21, 4  }
  0x2d   :  { %15 = sbr.rel (!%p13_p4) target bundleno = 1 (0x1), region = 77 }

</bundles_post_ra>
